<compile_context>
chip_gen: v5e
topology: v5e:2x2
jax: 0.10.0
libtpu: 0.0.40
codegen_flags: <defaults>
</compile_context>

<pallas_src>
import functools

import jax
import jax.numpy as jnp
from jax.experimental import pallas as pl
from jax.experimental.pallas import tpu as pltpu


def _round_up(a, b):
    return (a + b - 1) // b * b


def _auto_tile_rows(h_out, w_out, d, in_bytes):
    """Largest multiple-of-8 output-row tile whose double-buffered output block
    plus the resident image fits a VMEM budget safe on v7x (64 MiB physical);
    v5e/v6e have 128 MiB so this is conservative there."""
    budget = 40 << 20
    row_bytes = max(d * w_out * 4, 1)
    avail = max(budget - 2 * in_bytes, 2 * 8 * row_bytes)
    t = max(8, (avail // (2 * row_bytes)) // 8 * 8)
    return int(min(t, _round_up(h_out, 8)))


def _unfold_center_kernel(x_ref, o_ref, *, patch_size, center, tile_h):
    """x_ref: (C, H_pad, W)  whole (padded) image, VMEM-resident.
    o_ref: (D, tile_h, W_out) output tile; D = C*p*p, rows = output rows."""
    p = patch_size
    D, th, w_out = o_ref.shape
    C = x_ref.shape[0]

    # first output row of this grid step (tile_h is a multiple of 8)
    row0 = pl.multiple_of(pl.program_id(0) * tile_h, 8)

    def window(c, kh, kw):
        return x_ref[c, pl.ds(row0 + kh, th), pl.ds(kw, w_out)]

    mean = None
    if center:
        # per-patch mean = (1/D) * sum over the feature axis -> D-1 VPU vreg
        # adds per tile (no cross-lane reduction).
        acc = jnp.zeros((th, w_out), jnp.float32)
        for c in range(C):
            for kh in range(p):
                for kw in range(p):
                    acc = acc + window(c, kh, kw).astype(jnp.float32)
        mean = acc * (1.0 / D)

    # Write each (c, kh, kw) feature row straight into the output ref: one live
    # window at a time -> no vreg spills even for large D.
    # TODO(synk): for very large C*p*p switch these unrolled loops to a
    # lax.fori_loop over (kh, kw) to bound Mosaic compile time.
    for c in range(C):
        for kh in range(p):
            for kw in range(p):
                d = (c * p + kh) * p + kw
                win = window(c, kh, kw).astype(jnp.float32)
                if center:
                    win = win - mean
                o_ref[d, :, :] = win.astype(o_ref.dtype)


def patch_extractor(x, patch_size, *, pad=False, center=False,
                    batch_size=0, key=None, tile_rows=None):
    """JAX/Pallas equivalent of the PyTorch patch_extractor.forward.

    x: (1, C, H, W) float32 (N must be 1; the torch module calls .squeeze(0)).
    Returns (L, C*p*p) patches (or (batch_size, C*p*p) if batch_size > 0).
    """
    assert x.ndim == 4 and x.shape[0] == 1, "module semantics assume N == 1"
    p = patch_size
    padsize = p - 1

    # glue: circular-style pad (append first rows/cols), as in the torch code.
    # TODO(synk): could be folded into the kernel's halo fetch to avoid the
    # padded HBM copy; kept in the wrapper (O(input) vs O(p^2*input) output).
    if pad:
        x = jnp.concatenate([x, x[:, :, :padsize, :]], axis=2)
        x = jnp.concatenate([x, x[:, :, :, :padsize]], axis=3)

    x = x[0]                                        # (C, H, W)
    C, H, W = x.shape
    H_out, W_out = H - p + 1, W - p + 1
    assert H_out > 0 and W_out > 0
    L, D = H_out * W_out, C * p * p

    in_bytes = C * (H + p + 8) * W * 4              # resident-image estimate
    if tile_rows is None:
        tile_h = _auto_tile_rows(H_out, W_out, D, in_bytes)
    else:
        tile_h = max(8, _round_up(int(tile_rows), 8))
    tile_h = min(tile_h, _round_up(H_out, 8))

    # pad output rows up to a multiple of tile_h (garbage rows sliced off below)
    H_out_pad = _round_up(H_out, tile_h)
    H_pad = H_out_pad + p - 1
    if H_pad > H:
        x = jnp.pad(x, ((0, 0), (0, H_pad - H), (0, 0)))
    n_tiles = H_out_pad // tile_h

    out_tile_bytes = D * tile_h * W_out * 4
    in_block_bytes = C * H_pad * W * 4
    # double-buffered output tile + resident image + slack; capped for v7x.
    vmem_limit = int(min(max(2 * out_tile_bytes + 2 * in_block_bytes + (8 << 20),
                             32 << 20), 64 << 20))

    kernel = functools.partial(_unfold_center_kernel,
                               patch_size=p, center=center, tile_h=tile_h)

    out = pl.pallas_call(
        kernel,
        out_shape=jax.ShapeDtypeStruct((D, H_out_pad, W_out), x.dtype),
        grid=(n_tiles,),
        in_specs=[pl.BlockSpec((C, H_pad, W), lambda i: (0, 0, 0))],
        out_specs=pl.BlockSpec((D, tile_h, W_out), lambda i: (0, i, 0)),
        compiler_params=pltpu.CompilerParams(
            dimension_semantics=("parallel",),      # megacore sharding on v7x
            vmem_limit_bytes=vmem_limit),
    )(x)

    # back to the torch Unfold layout: (L, D), l = oh*W_out + ow (row-major),
    # d = c*p*p + kh*p + kw (channel-major then kernel offsets).
    patches = out[:, :H_out, :].reshape(D, L).T

    # TODO(synk): `patches[~patches.isnan().any(dim=1)]` yields a
    # data-dependent output shape; not expressible with static shapes on TPU
    # (inputs here contain no NaNs, so it is a no-op).

    if batch_size > 0:
        # glue: random subsampling (deterministic JAX key; torch.randperm RNG
        # stream cannot be reproduced bit-exactly anyway).
        # TODO(synk): could pass the permuted indices as scalar-prefetch
        # (PrefetchScalarGridSpec + pl.Element row gather) and extract only
        # batch_size patches in-kernel instead of materializing all L.
        idx = jax.random.permutation(key, L)[:batch_size]
        patches = patches[idx, :]

    return patches


def _reference(x, patch_size, pad, center):
    """Pure-JAX reference of nn.Unfold + centering for verification."""
    padsize = patch_size - 1
    if pad:
        x = jnp.concatenate([x, x[:, :, :padsize, :]], axis=2)
        x = jnp.concatenate([x, x[:, :, :, :padsize]], axis=3)
    x = x[0]
    C, H, W = x.shape
    Ho, Wo = H - patch_size + 1, W - patch_size + 1
    cols = []
    for c in range(C):
        for kh in range(patch_size):
            for kw in range(patch_size):
                cols.append(x[c, kh:kh + Ho, kw:kw + Wo])
    pat = jnp.stack(cols, axis=-1).reshape(Ho * Wo, -1)
    if center:
        pat = pat - jnp.mean(pat, axis=-1, keepdims=True)
    return pat


if __name__ == "__main__":
    key = jax.random.PRNGKey(0)
    k_img, k_sub = jax.random.split(key)

    # small deterministic input consistent with the module: N=1, C=4, 16x16
    x = jax.random.normal(k_img, (1, 4, 16, 16), dtype=jnp.float32)
    patch_size = 4
    D = 4 * patch_size * patch_size

    # pad + center, forced 2-step row-tile grid
    out = patch_extractor(x, patch_size, pad=True, center=True, tile_rows=8)
    out = jax.block_until_ready(out)
    ref = _reference(x, patch_size, pad=True, center=True)
    assert out.shape == (16 * 16, D)
    assert jnp.allclose(out, ref, atol=1e-5, rtol=1e-5)

    # auto tile sizing (single grid step at this toy size)
    out_auto = patch_extractor(x, patch_size, pad=True, center=True)
    out_auto = jax.block_until_ready(out_auto)
    assert jnp.allclose(out_auto, ref, atol=1e-5, rtol=1e-5)

    # no pad / no center: H_out=13 exercises output-row padding + slicing
    out_np = patch_extractor(x, patch_size, pad=False, center=False, tile_rows=8)
    out_np = jax.block_until_ready(out_np)
    ref_np = _reference(x, patch_size, pad=False, center=False)
    assert out_np.shape == (13 * 13, D)
    assert jnp.allclose(out_np, ref_np, atol=1e-5, rtol=1e-5)

    # batch_size > 0 subsampling path (glue)
    out_sub = patch_extractor(x, patch_size, pad=False, center=False,
                              batch_size=8, key=k_sub, tile_rows=8)
    out_sub = jax.block_until_ready(out_sub)
    assert out_sub.shape == (8, D)

    print("KERNEL_OK")
</pallas_src>

<mosaic_0001>
module attributes {stable_mosaic.version = 11 : i64} {
  func.func @_unfold_center_kernel(%arg0: i32, %arg1: memref<4x19x19xf32, #tpu.memory_space<vmem>>, %arg2: memref<64x8x16xf32, #tpu.memory_space<vmem>>) attributes {dimension_semantics = [#tpu.dimension_semantics<parallel>], iteration_bounds = array<i64: 2>, scalar_prefetch = 0 : i64, scratch_operands = 0 : i64, tpu.core_type = #tpu.core_type<tc>, window_params = [{pipeline_mode = #tpu.pipeline_mode<synchronous>, transform_indices = @transform_0, window_bounds = array<i64: 4, 19, 19>}, {transform_indices = @transform_1, window_bounds = array<i64: 64, 8, 16>}]} {
    %c8_i32 = arith.constant 8 : i32
    %0 = arith.muli %arg0, %c8_i32 : i32
    %1 = tpu.assume_multiple %0, 8 : i32
    %cst = arith.constant 0.000000e+00 : f32
    %2 = vector.broadcast %cst : f32 to vector<8x16xf32>
    %c0_i32 = arith.constant 0 : i32
    %3 = arith.addi %1, %c0_i32 : i32
    %c0 = arith.constant 0 : index
    %4 = arith.index_cast %3 : i32 to index
    %c0_0 = arith.constant 0 : index
    %5 = vector.load %arg1[%c0, %4, %c0_0] : memref<4x19x19xf32, #tpu.memory_space<vmem>>, vector<1x8x16xf32>
    %6 = vector.shape_cast %5 : vector<1x8x16xf32> to vector<8x16xf32>
    %7 = arith.addf %2, %6 : vector<8x16xf32>
    %c0_i32_1 = arith.constant 0 : i32
    %8 = arith.addi %1, %c0_i32_1 : i32
    %c0_2 = arith.constant 0 : index
    %9 = arith.index_cast %8 : i32 to index
    %c1 = arith.constant 1 : index
    %10 = vector.load %arg1[%c0_2, %9, %c1] : memref<4x19x19xf32, #tpu.memory_space<vmem>>, vector<1x8x16xf32>
    %11 = vector.shape_cast %10 : vector<1x8x16xf32> to vector<8x16xf32>
    %12 = arith.addf %7, %11 : vector<8x16xf32>
    %c0_i32_3 = arith.constant 0 : i32
    %13 = arith.addi %1, %c0_i32_3 : i32
    %c0_4 = arith.constant 0 : index
    %14 = arith.index_cast %13 : i32 to index
    %c2 = arith.constant 2 : index
    %15 = vector.load %arg1[%c0_4, %14, %c2] : memref<4x19x19xf32, #tpu.memory_space<vmem>>, vector<1x8x16xf32>
    %16 = vector.shape_cast %15 : vector<1x8x16xf32> to vector<8x16xf32>
    %17 = arith.addf %12, %16 : vector<8x16xf32>
    %c0_i32_5 = arith.constant 0 : i32
    %18 = arith.addi %1, %c0_i32_5 : i32
    %c0_6 = arith.constant 0 : index
    %19 = arith.index_cast %18 : i32 to index
    %c3 = arith.constant 3 : index
    %20 = vector.load %arg1[%c0_6, %19, %c3] : memref<4x19x19xf32, #tpu.memory_space<vmem>>, vector<1x8x16xf32>
    %21 = vector.shape_cast %20 : vector<1x8x16xf32> to vector<8x16xf32>
    %22 = arith.addf %17, %21 : vector<8x16xf32>
    %c1_i32 = arith.constant 1 : i32
    %23 = arith.addi %1, %c1_i32 : i32
    %c0_7 = arith.constant 0 : index
    %24 = arith.index_cast %23 : i32 to index
    %c0_8 = arith.constant 0 : index
    %25 = vector.load %arg1[%c0_7, %24, %c0_8] : memref<4x19x19xf32, #tpu.memory_space<vmem>>, vector<1x8x16xf32>
    %26 = vector.shape_cast %25 : vector<1x8x16xf32> to vector<8x16xf32>
    %27 = arith.addf %22, %26 : vector<8x16xf32>
    %c1_i32_9 = arith.constant 1 : i32
    %28 = arith.addi %1, %c1_i32_9 : i32
    %c0_10 = arith.constant 0 : index
    %29 = arith.index_cast %28 : i32 to index
    %c1_11 = arith.constant 1 : index
    %30 = vector.load %arg1[%c0_10, %29, %c1_11] : memref<4x19x19xf32, #tpu.memory_space<vmem>>, vector<1x8x16xf32>
    %31 = vector.shape_cast %30 : vector<1x8x16xf32> to vector<8x16xf32>
    %32 = arith.addf %27, %31 : vector<8x16xf32>
    %c1_i32_12 = arith.constant 1 : i32
    %33 = arith.addi %1, %c1_i32_12 : i32
    %c0_13 = arith.constant 0 : index
    %34 = arith.index_cast %33 : i32 to index
    %c2_14 = arith.constant 2 : index
    %35 = vector.load %arg1[%c0_13, %34, %c2_14] : memref<4x19x19xf32, #tpu.memory_space<vmem>>, vector<1x8x16xf32>
    %36 = vector.shape_cast %35 : vector<1x8x16xf32> to vector<8x16xf32>
    %37 = arith.addf %32, %36 : vector<8x16xf32>
    %c1_i32_15 = arith.constant 1 : i32
    %38 = arith.addi %1, %c1_i32_15 : i32
    %c0_16 = arith.constant 0 : index
    %39 = arith.index_cast %38 : i32 to index
    %c3_17 = arith.constant 3 : index
    %40 = vector.load %arg1[%c0_16, %39, %c3_17] : memref<4x19x19xf32, #tpu.memory_space<vmem>>, vector<1x8x16xf32>
    %41 = vector.shape_cast %40 : vector<1x8x16xf32> to vector<8x16xf32>
    %42 = arith.addf %37, %41 : vector<8x16xf32>
    %c2_i32 = arith.constant 2 : i32
    %43 = arith.addi %1, %c2_i32 : i32
    %c0_18 = arith.constant 0 : index
    %44 = arith.index_cast %43 : i32 to index
    %c0_19 = arith.constant 0 : index
    %45 = vector.load %arg1[%c0_18, %44, %c0_19] : memref<4x19x19xf32, #tpu.memory_space<vmem>>, vector<1x8x16xf32>
    %46 = vector.shape_cast %45 : vector<1x8x16xf32> to vector<8x16xf32>
    %47 = arith.addf %42, %46 : vector<8x16xf32>
    %c2_i32_20 = arith.constant 2 : i32
    %48 = arith.addi %1, %c2_i32_20 : i32
    %c0_21 = arith.constant 0 : index
    %49 = arith.index_cast %48 : i32 to index
    %c1_22 = arith.constant 1 : index
    %50 = vector.load %arg1[%c0_21, %49, %c1_22] : memref<4x19x19xf32, #tpu.memory_space<vmem>>, vector<1x8x16xf32>
    %51 = vector.shape_cast %50 : vector<1x8x16xf32> to vector<8x16xf32>
    %52 = arith.addf %47, %51 : vector<8x16xf32>
    %c2_i32_23 = arith.constant 2 : i32
    %53 = arith.addi %1, %c2_i32_23 : i32
    %c0_24 = arith.constant 0 : index
    %54 = arith.index_cast %53 : i32 to index
    %c2_25 = arith.constant 2 : index
    %55 = vector.load %arg1[%c0_24, %54, %c2_25] : memref<4x19x19xf32, #tpu.memory_space<vmem>>, vector<1x8x16xf32>
    %56 = vector.shape_cast %55 : vector<1x8x16xf32> to vector<8x16xf32>
    %57 = arith.addf %52, %56 : vector<8x16xf32>
    %c2_i32_26 = arith.constant 2 : i32
    %58 = arith.addi %1, %c2_i32_26 : i32
    %c0_27 = arith.constant 0 : index
    %59 = arith.index_cast %58 : i32 to index
    %c3_28 = arith.constant 3 : index
    %60 = vector.load %arg1[%c0_27, %59, %c3_28] : memref<4x19x19xf32, #tpu.memory_space<vmem>>, vector<1x8x16xf32>
    %61 = vector.shape_cast %60 : vector<1x8x16xf32> to vector<8x16xf32>
    %62 = arith.addf %57, %61 : vector<8x16xf32>
    %c3_i32 = arith.constant 3 : i32
    %63 = arith.addi %1, %c3_i32 : i32
    %c0_29 = arith.constant 0 : index
    %64 = arith.index_cast %63 : i32 to index
    %c0_30 = arith.constant 0 : index
    %65 = vector.load %arg1[%c0_29, %64, %c0_30] : memref<4x19x19xf32, #tpu.memory_space<vmem>>, vector<1x8x16xf32>
    %66 = vector.shape_cast %65 : vector<1x8x16xf32> to vector<8x16xf32>
    %67 = arith.addf %62, %66 : vector<8x16xf32>
    %c3_i32_31 = arith.constant 3 : i32
    %68 = arith.addi %1, %c3_i32_31 : i32
    %c0_32 = arith.constant 0 : index
    %69 = arith.index_cast %68 : i32 to index
    %c1_33 = arith.constant 1 : index
    %70 = vector.load %arg1[%c0_32, %69, %c1_33] : memref<4x19x19xf32, #tpu.memory_space<vmem>>, vector<1x8x16xf32>
    %71 = vector.shape_cast %70 : vector<1x8x16xf32> to vector<8x16xf32>
    %72 = arith.addf %67, %71 : vector<8x16xf32>
    %c3_i32_34 = arith.constant 3 : i32
    %73 = arith.addi %1, %c3_i32_34 : i32
    %c0_35 = arith.constant 0 : index
    %74 = arith.index_cast %73 : i32 to index
    %c2_36 = arith.constant 2 : index
    %75 = vector.load %arg1[%c0_35, %74, %c2_36] : memref<4x19x19xf32, #tpu.memory_space<vmem>>, vector<1x8x16xf32>
    %76 = vector.shape_cast %75 : vector<1x8x16xf32> to vector<8x16xf32>
    %77 = arith.addf %72, %76 : vector<8x16xf32>
    %c3_i32_37 = arith.constant 3 : i32
    %78 = arith.addi %1, %c3_i32_37 : i32
    %c0_38 = arith.constant 0 : index
    %79 = arith.index_cast %78 : i32 to index
    %c3_39 = arith.constant 3 : index
    %80 = vector.load %arg1[%c0_38, %79, %c3_39] : memref<4x19x19xf32, #tpu.memory_space<vmem>>, vector<1x8x16xf32>
    %81 = vector.shape_cast %80 : vector<1x8x16xf32> to vector<8x16xf32>
    %82 = arith.addf %77, %81 : vector<8x16xf32>
    %c0_i32_40 = arith.constant 0 : i32
    %83 = arith.addi %1, %c0_i32_40 : i32
    %c1_41 = arith.constant 1 : index
    %84 = arith.index_cast %83 : i32 to index
    %c0_42 = arith.constant 0 : index
    %85 = vector.load %arg1[%c1_41, %84, %c0_42] : memref<4x19x19xf32, #tpu.memory_space<vmem>>, vector<1x8x16xf32>
    %86 = vector.shape_cast %85 : vector<1x8x16xf32> to vector<8x16xf32>
    %87 = arith.addf %82, %86 : vector<8x16xf32>
    %c0_i32_43 = arith.constant 0 : i32
    %88 = arith.addi %1, %c0_i32_43 : i32
    %c1_44 = arith.constant 1 : index
    %89 = arith.index_cast %88 : i32 to index
    %c1_45 = arith.constant 1 : index
    %90 = vector.load %arg1[%c1_44, %89, %c1_45] : memref<4x19x19xf32, #tpu.memory_space<vmem>>, vector<1x8x16xf32>
    %91 = vector.shape_cast %90 : vector<1x8x16xf32> to vector<8x16xf32>
    %92 = arith.addf %87, %91 : vector<8x16xf32>
    %c0_i32_46 = arith.constant 0 : i32
    %93 = arith.addi %1, %c0_i32_46 : i32
    %c1_47 = arith.constant 1 : index
    %94 = arith.index_cast %93 : i32 to index
    %c2_48 = arith.constant 2 : index
    %95 = vector.load %arg1[%c1_47, %94, %c2_48] : memref<4x19x19xf32, #tpu.memory_space<vmem>>, vector<1x8x16xf32>
    %96 = vector.shape_cast %95 : vector<1x8x16xf32> to vector<8x16xf32>
    %97 = arith.addf %92, %96 : vector<8x16xf32>
    %c0_i32_49 = arith.constant 0 : i32
    %98 = arith.addi %1, %c0_i32_49 : i32
    %c1_50 = arith.constant 1 : index
    %99 = arith.index_cast %98 : i32 to index
    %c3_51 = arith.constant 3 : index
    %100 = vector.load %arg1[%c1_50, %99, %c3_51] : memref<4x19x19xf32, #tpu.memory_space<vmem>>, vector<1x8x16xf32>
    %101 = vector.shape_cast %100 : vector<1x8x16xf32> to vector<8x16xf32>
    %102 = arith.addf %97, %101 : vector<8x16xf32>
    %c1_i32_52 = arith.constant 1 : i32
    %103 = arith.addi %1, %c1_i32_52 : i32
    %c1_53 = arith.constant 1 : index
    %104 = arith.index_cast %103 : i32 to index
    %c0_54 = arith.constant 0 : index
    %105 = vector.load %arg1[%c1_53, %104, %c0_54] : memref<4x19x19xf32, #tpu.memory_space<vmem>>, vector<1x8x16xf32>
    %106 = vector.shape_cast %105 : vector<1x8x16xf32> to vector<8x16xf32>
    %107 = arith.addf %102, %106 : vector<8x16xf32>
    %c1_i32_55 = arith.constant 1 : i32
    %108 = arith.addi %1, %c1_i32_55 : i32
    %c1_56 = arith.constant 1 : index
    %109 = arith.index_cast %108 : i32 to index
    %c1_57 = arith.constant 1 : index
    %110 = vector.load %arg1[%c1_56, %109, %c1_57] : memref<4x19x19xf32, #tpu.memory_space<vmem>>, vector<1x8x16xf32>
    %111 = vector.shape_cast %110 : vector<1x8x16xf32> to vector<8x16xf32>
    %112 = arith.addf %107, %111 : vector<8x16xf32>
    %c1_i32_58 = arith.constant 1 : i32
    %113 = arith.addi %1, %c1_i32_58 : i32
    %c1_59 = arith.constant 1 : index
    %114 = arith.index_cast %113 : i32 to index
    %c2_60 = arith.constant 2 : index
    %115 = vector.load %arg1[%c1_59, %114, %c2_60] : memref<4x19x19xf32, #tpu.memory_space<vmem>>, vector<1x8x16xf32>
    %116 = vector.shape_cast %115 : vector<1x8x16xf32> to vector<8x16xf32>
    %117 = arith.addf %112, %116 : vector<8x16xf32>
    %c1_i32_61 = arith.constant 1 : i32
    %118 = arith.addi %1, %c1_i32_61 : i32
    %c1_62 = arith.constant 1 : index
    %119 = arith.index_cast %118 : i32 to index
    %c3_63 = arith.constant 3 : index
    %120 = vector.load %arg1[%c1_62, %119, %c3_63] : memref<4x19x19xf32, #tpu.memory_space<vmem>>, vector<1x8x16xf32>
    %121 = vector.shape_cast %120 : vector<1x8x16xf32> to vector<8x16xf32>
    %122 = arith.addf %117, %121 : vector<8x16xf32>
    %c2_i32_64 = arith.constant 2 : i32
    %123 = arith.addi %1, %c2_i32_64 : i32
    %c1_65 = arith.constant 1 : index
    %124 = arith.index_cast %123 : i32 to index
    %c0_66 = arith.constant 0 : index
    %125 = vector.load %arg1[%c1_65, %124, %c0_66] : memref<4x19x19xf32, #tpu.memory_space<vmem>>, vector<1x8x16xf32>
    %126 = vector.shape_cast %125 : vector<1x8x16xf32> to vector<8x16xf32>
    %127 = arith.addf %122, %126 : vector<8x16xf32>
    %c2_i32_67 = arith.constant 2 : i32
    %128 = arith.addi %1, %c2_i32_67 : i32
    %c1_68 = arith.constant 1 : index
    %129 = arith.index_cast %128 : i32 to index
    %c1_69 = arith.constant 1 : index
    %130 = vector.load %arg1[%c1_68, %129, %c1_69] : memref<4x19x19xf32, #tpu.memory_space<vmem>>, vector<1x8x16xf32>
    %131 = vector.shape_cast %130 : vector<1x8x16xf32> to vector<8x16xf32>
    %132 = arith.addf %127, %131 : vector<8x16xf32>
    %c2_i32_70 = arith.constant 2 : i32
    %133 = arith.addi %1, %c2_i32_70 : i32
    %c1_71 = arith.constant 1 : index
    %134 = arith.index_cast %133 : i32 to index
    %c2_72 = arith.constant 2 : index
    %135 = vector.load %arg1[%c1_71, %134, %c2_72] : memref<4x19x19xf32, #tpu.memory_space<vmem>>, vector<1x8x16xf32>
    %136 = vector.shape_cast %135 : vector<1x8x16xf32> to vector<8x16xf32>
    %137 = arith.addf %132, %136 : vector<8x16xf32>
    %c2_i32_73 = arith.constant 2 : i32
    %138 = arith.addi %1, %c2_i32_73 : i32
    %c1_74 = arith.constant 1 : index
    %139 = arith.index_cast %138 : i32 to index
    %c3_75 = arith.constant 3 : index
    %140 = vector.load %arg1[%c1_74, %139, %c3_75] : memref<4x19x19xf32, #tpu.memory_space<vmem>>, vector<1x8x16xf32>
    %141 = vector.shape_cast %140 : vector<1x8x16xf32> to vector<8x16xf32>
    %142 = arith.addf %137, %141 : vector<8x16xf32>
    %c3_i32_76 = arith.constant 3 : i32
    %143 = arith.addi %1, %c3_i32_76 : i32
    %c1_77 = arith.constant 1 : index
    %144 = arith.index_cast %143 : i32 to index
    %c0_78 = arith.constant 0 : index
    %145 = vector.load %arg1[%c1_77, %144, %c0_78] : memref<4x19x19xf32, #tpu.memory_space<vmem>>, vector<1x8x16xf32>
    %146 = vector.shape_cast %145 : vector<1x8x16xf32> to vector<8x16xf32>
    %147 = arith.addf %142, %146 : vector<8x16xf32>
    %c3_i32_79 = arith.constant 3 : i32
    %148 = arith.addi %1, %c3_i32_79 : i32
    %c1_80 = arith.constant 1 : index
    %149 = arith.index_cast %148 : i32 to index
    %c1_81 = arith.constant 1 : index
    %150 = vector.load %arg1[%c1_80, %149, %c1_81] : memref<4x19x19xf32, #tpu.memory_space<vmem>>, vector<1x8x16xf32>
    %151 = vector.shape_cast %150 : vector<1x8x16xf32> to vector<8x16xf32>
    %152 = arith.addf %147, %151 : vector<8x16xf32>
    %c3_i32_82 = arith.constant 3 : i32
    %153 = arith.addi %1, %c3_i32_82 : i32
    %c1_83 = arith.constant 1 : index
    %154 = arith.index_cast %153 : i32 to index
    %c2_84 = arith.constant 2 : index
    %155 = vector.load %arg1[%c1_83, %154, %c2_84] : memref<4x19x19xf32, #tpu.memory_space<vmem>>, vector<1x8x16xf32>
    %156 = vector.shape_cast %155 : vector<1x8x16xf32> to vector<8x16xf32>
    %157 = arith.addf %152, %156 : vector<8x16xf32>
    %c3_i32_85 = arith.constant 3 : i32
    %158 = arith.addi %1, %c3_i32_85 : i32
    %c1_86 = arith.constant 1 : index
    %159 = arith.index_cast %158 : i32 to index
    %c3_87 = arith.constant 3 : index
    %160 = vector.load %arg1[%c1_86, %159, %c3_87] : memref<4x19x19xf32, #tpu.memory_space<vmem>>, vector<1x8x16xf32>
    %161 = vector.shape_cast %160 : vector<1x8x16xf32> to vector<8x16xf32>
    %162 = arith.addf %157, %161 : vector<8x16xf32>
    %c0_i32_88 = arith.constant 0 : i32
    %163 = arith.addi %1, %c0_i32_88 : i32
    %c2_89 = arith.constant 2 : index
    %164 = arith.index_cast %163 : i32 to index
    %c0_90 = arith.constant 0 : index
    %165 = vector.load %arg1[%c2_89, %164, %c0_90] : memref<4x19x19xf32, #tpu.memory_space<vmem>>, vector<1x8x16xf32>
    %166 = vector.shape_cast %165 : vector<1x8x16xf32> to vector<8x16xf32>
    %167 = arith.addf %162, %166 : vector<8x16xf32>
    %c0_i32_91 = arith.constant 0 : i32
    %168 = arith.addi %1, %c0_i32_91 : i32
    %c2_92 = arith.constant 2 : index
    %169 = arith.index_cast %168 : i32 to index
    %c1_93 = arith.constant 1 : index
    %170 = vector.load %arg1[%c2_92, %169, %c1_93] : memref<4x19x19xf32, #tpu.memory_space<vmem>>, vector<1x8x16xf32>
    %171 = vector.shape_cast %170 : vector<1x8x16xf32> to vector<8x16xf32>
    %172 = arith.addf %167, %171 : vector<8x16xf32>
    %c0_i32_94 = arith.constant 0 : i32
    %173 = arith.addi %1, %c0_i32_94 : i32
    %c2_95 = arith.constant 2 : index
    %174 = arith.index_cast %173 : i32 to index
    %c2_96 = arith.constant 2 : index
    %175 = vector.load %arg1[%c2_95, %174, %c2_96] : memref<4x19x19xf32, #tpu.memory_space<vmem>>, vector<1x8x16xf32>
    %176 = vector.shape_cast %175 : vector<1x8x16xf32> to vector<8x16xf32>
    %177 = arith.addf %172, %176 : vector<8x16xf32>
    %c0_i32_97 = arith.constant 0 : i32
    %178 = arith.addi %1, %c0_i32_97 : i32
    %c2_98 = arith.constant 2 : index
    %179 = arith.index_cast %178 : i32 to index
    %c3_99 = arith.constant 3 : index
    %180 = vector.load %arg1[%c2_98, %179, %c3_99] : memref<4x19x19xf32, #tpu.memory_space<vmem>>, vector<1x8x16xf32>
    %181 = vector.shape_cast %180 : vector<1x8x16xf32> to vector<8x16xf32>
    %182 = arith.addf %177, %181 : vector<8x16xf32>
    %c1_i32_100 = arith.constant 1 : i32
    %183 = arith.addi %1, %c1_i32_100 : i32
    %c2_101 = arith.constant 2 : index
    %184 = arith.index_cast %183 : i32 to index
    %c0_102 = arith.constant 0 : index
    %185 = vector.load %arg1[%c2_101, %184, %c0_102] : memref<4x19x19xf32, #tpu.memory_space<vmem>>, vector<1x8x16xf32>
    %186 = vector.shape_cast %185 : vector<1x8x16xf32> to vector<8x16xf32>
    %187 = arith.addf %182, %186 : vector<8x16xf32>
    %c1_i32_103 = arith.constant 1 : i32
    %188 = arith.addi %1, %c1_i32_103 : i32
    %c2_104 = arith.constant 2 : index
    %189 = arith.index_cast %188 : i32 to index
    %c1_105 = arith.constant 1 : index
    %190 = vector.load %arg1[%c2_104, %189, %c1_105] : memref<4x19x19xf32, #tpu.memory_space<vmem>>, vector<1x8x16xf32>
    %191 = vector.shape_cast %190 : vector<1x8x16xf32> to vector<8x16xf32>
    %192 = arith.addf %187, %191 : vector<8x16xf32>
    %c1_i32_106 = arith.constant 1 : i32
    %193 = arith.addi %1, %c1_i32_106 : i32
    %c2_107 = arith.constant 2 : index
    %194 = arith.index_cast %193 : i32 to index
    %c2_108 = arith.constant 2 : index
    %195 = vector.load %arg1[%c2_107, %194, %c2_108] : memref<4x19x19xf32, #tpu.memory_space<vmem>>, vector<1x8x16xf32>
    %196 = vector.shape_cast %195 : vector<1x8x16xf32> to vector<8x16xf32>
    %197 = arith.addf %192, %196 : vector<8x16xf32>
    %c1_i32_109 = arith.constant 1 : i32
    %198 = arith.addi %1, %c1_i32_109 : i32
    %c2_110 = arith.constant 2 : index
    %199 = arith.index_cast %198 : i32 to index
    %c3_111 = arith.constant 3 : index
    %200 = vector.load %arg1[%c2_110, %199, %c3_111] : memref<4x19x19xf32, #tpu.memory_space<vmem>>, vector<1x8x16xf32>
    %201 = vector.shape_cast %200 : vector<1x8x16xf32> to vector<8x16xf32>
    %202 = arith.addf %197, %201 : vector<8x16xf32>
    %c2_i32_112 = arith.constant 2 : i32
    %203 = arith.addi %1, %c2_i32_112 : i32
    %c2_113 = arith.constant 2 : index
    %204 = arith.index_cast %203 : i32 to index
    %c0_114 = arith.constant 0 : index
    %205 = vector.load %arg1[%c2_113, %204, %c0_114] : memref<4x19x19xf32, #tpu.memory_space<vmem>>, vector<1x8x16xf32>
    %206 = vector.shape_cast %205 : vector<1x8x16xf32> to vector<8x16xf32>
    %207 = arith.addf %202, %206 : vector<8x16xf32>
    %c2_i32_115 = arith.constant 2 : i32
    %208 = arith.addi %1, %c2_i32_115 : i32
    %c2_116 = arith.constant 2 : index
    %209 = arith.index_cast %208 : i32 to index
    %c1_117 = arith.constant 1 : index
    %210 = vector.load %arg1[%c2_116, %209, %c1_117] : memref<4x19x19xf32, #tpu.memory_space<vmem>>, vector<1x8x16xf32>
    %211 = vector.shape_cast %210 : vector<1x8x16xf32> to vector<8x16xf32>
    %212 = arith.addf %207, %211 : vector<8x16xf32>
    %c2_i32_118 = arith.constant 2 : i32
    %213 = arith.addi %1, %c2_i32_118 : i32
    %c2_119 = arith.constant 2 : index
    %214 = arith.index_cast %213 : i32 to index
    %c2_120 = arith.constant 2 : index
    %215 = vector.load %arg1[%c2_119, %214, %c2_120] : memref<4x19x19xf32, #tpu.memory_space<vmem>>, vector<1x8x16xf32>
    %216 = vector.shape_cast %215 : vector<1x8x16xf32> to vector<8x16xf32>
    %217 = arith.addf %212, %216 : vector<8x16xf32>
    %c2_i32_121 = arith.constant 2 : i32
    %218 = arith.addi %1, %c2_i32_121 : i32
    %c2_122 = arith.constant 2 : index
    %219 = arith.index_cast %218 : i32 to index
    %c3_123 = arith.constant 3 : index
    %220 = vector.load %arg1[%c2_122, %219, %c3_123] : memref<4x19x19xf32, #tpu.memory_space<vmem>>, vector<1x8x16xf32>
    %221 = vector.shape_cast %220 : vector<1x8x16xf32> to vector<8x16xf32>
    %222 = arith.addf %217, %221 : vector<8x16xf32>
    %c3_i32_124 = arith.constant 3 : i32
    %223 = arith.addi %1, %c3_i32_124 : i32
    %c2_125 = arith.constant 2 : index
    %224 = arith.index_cast %223 : i32 to index
    %c0_126 = arith.constant 0 : index
    %225 = vector.load %arg1[%c2_125, %224, %c0_126] : memref<4x19x19xf32, #tpu.memory_space<vmem>>, vector<1x8x16xf32>
    %226 = vector.shape_cast %225 : vector<1x8x16xf32> to vector<8x16xf32>
    %227 = arith.addf %222, %226 : vector<8x16xf32>
    %c3_i32_127 = arith.constant 3 : i32
    %228 = arith.addi %1, %c3_i32_127 : i32
    %c2_128 = arith.constant 2 : index
    %229 = arith.index_cast %228 : i32 to index
    %c1_129 = arith.constant 1 : index
    %230 = vector.load %arg1[%c2_128, %229, %c1_129] : memref<4x19x19xf32, #tpu.memory_space<vmem>>, vector<1x8x16xf32>
    %231 = vector.shape_cast %230 : vector<1x8x16xf32> to vector<8x16xf32>
    %232 = arith.addf %227, %231 : vector<8x16xf32>
    %c3_i32_130 = arith.constant 3 : i32
    %233 = arith.addi %1, %c3_i32_130 : i32
    %c2_131 = arith.constant 2 : index
    %234 = arith.index_cast %233 : i32 to index
    %c2_132 = arith.constant 2 : index
    %235 = vector.load %arg1[%c2_131, %234, %c2_132] : memref<4x19x19xf32, #tpu.memory_space<vmem>>, vector<1x8x16xf32>
    %236 = vector.shape_cast %235 : vector<1x8x16xf32> to vector<8x16xf32>
    %237 = arith.addf %232, %236 : vector<8x16xf32>
    %c3_i32_133 = arith.constant 3 : i32
    %238 = arith.addi %1, %c3_i32_133 : i32
    %c2_134 = arith.constant 2 : index
    %239 = arith.index_cast %238 : i32 to index
    %c3_135 = arith.constant 3 : index
    %240 = vector.load %arg1[%c2_134, %239, %c3_135] : memref<4x19x19xf32, #tpu.memory_space<vmem>>, vector<1x8x16xf32>
    %241 = vector.shape_cast %240 : vector<1x8x16xf32> to vector<8x16xf32>
    %242 = arith.addf %237, %241 : vector<8x16xf32>
    %c0_i32_136 = arith.constant 0 : i32
    %243 = arith.addi %1, %c0_i32_136 : i32
    %c3_137 = arith.constant 3 : index
    %244 = arith.index_cast %243 : i32 to index
    %c0_138 = arith.constant 0 : index
    %245 = vector.load %arg1[%c3_137, %244, %c0_138] : memref<4x19x19xf32, #tpu.memory_space<vmem>>, vector<1x8x16xf32>
    %246 = vector.shape_cast %245 : vector<1x8x16xf32> to vector<8x16xf32>
    %247 = arith.addf %242, %246 : vector<8x16xf32>
    %c0_i32_139 = arith.constant 0 : i32
    %248 = arith.addi %1, %c0_i32_139 : i32
    %c3_140 = arith.constant 3 : index
    %249 = arith.index_cast %248 : i32 to index
    %c1_141 = arith.constant 1 : index
    %250 = vector.load %arg1[%c3_140, %249, %c1_141] : memref<4x19x19xf32, #tpu.memory_space<vmem>>, vector<1x8x16xf32>
    %251 = vector.shape_cast %250 : vector<1x8x16xf32> to vector<8x16xf32>
    %252 = arith.addf %247, %251 : vector<8x16xf32>
    %c0_i32_142 = arith.constant 0 : i32
    %253 = arith.addi %1, %c0_i32_142 : i32
    %c3_143 = arith.constant 3 : index
    %254 = arith.index_cast %253 : i32 to index
    %c2_144 = arith.constant 2 : index
    %255 = vector.load %arg1[%c3_143, %254, %c2_144] : memref<4x19x19xf32, #tpu.memory_space<vmem>>, vector<1x8x16xf32>
    %256 = vector.shape_cast %255 : vector<1x8x16xf32> to vector<8x16xf32>
    %257 = arith.addf %252, %256 : vector<8x16xf32>
    %c0_i32_145 = arith.constant 0 : i32
    %258 = arith.addi %1, %c0_i32_145 : i32
    %c3_146 = arith.constant 3 : index
    %259 = arith.index_cast %258 : i32 to index
    %c3_147 = arith.constant 3 : index
    %260 = vector.load %arg1[%c3_146, %259, %c3_147] : memref<4x19x19xf32, #tpu.memory_space<vmem>>, vector<1x8x16xf32>
    %261 = vector.shape_cast %260 : vector<1x8x16xf32> to vector<8x16xf32>
    %262 = arith.addf %257, %261 : vector<8x16xf32>
    %c1_i32_148 = arith.constant 1 : i32
    %263 = arith.addi %1, %c1_i32_148 : i32
    %c3_149 = arith.constant 3 : index
    %264 = arith.index_cast %263 : i32 to index
    %c0_150 = arith.constant 0 : index
    %265 = vector.load %arg1[%c3_149, %264, %c0_150] : memref<4x19x19xf32, #tpu.memory_space<vmem>>, vector<1x8x16xf32>
    %266 = vector.shape_cast %265 : vector<1x8x16xf32> to vector<8x16xf32>
    %267 = arith.addf %262, %266 : vector<8x16xf32>
    %c1_i32_151 = arith.constant 1 : i32
    %268 = arith.addi %1, %c1_i32_151 : i32
    %c3_152 = arith.constant 3 : index
    %269 = arith.index_cast %268 : i32 to index
    %c1_153 = arith.constant 1 : index
    %270 = vector.load %arg1[%c3_152, %269, %c1_153] : memref<4x19x19xf32, #tpu.memory_space<vmem>>, vector<1x8x16xf32>
    %271 = vector.shape_cast %270 : vector<1x8x16xf32> to vector<8x16xf32>
    %272 = arith.addf %267, %271 : vector<8x16xf32>
    %c1_i32_154 = arith.constant 1 : i32
    %273 = arith.addi %1, %c1_i32_154 : i32
    %c3_155 = arith.constant 3 : index
    %274 = arith.index_cast %273 : i32 to index
    %c2_156 = arith.constant 2 : index
    %275 = vector.load %arg1[%c3_155, %274, %c2_156] : memref<4x19x19xf32, #tpu.memory_space<vmem>>, vector<1x8x16xf32>
    %276 = vector.shape_cast %275 : vector<1x8x16xf32> to vector<8x16xf32>
    %277 = arith.addf %272, %276 : vector<8x16xf32>
    %c1_i32_157 = arith.constant 1 : i32
    %278 = arith.addi %1, %c1_i32_157 : i32
    %c3_158 = arith.constant 3 : index
    %279 = arith.index_cast %278 : i32 to index
    %c3_159 = arith.constant 3 : index
    %280 = vector.load %arg1[%c3_158, %279, %c3_159] : memref<4x19x19xf32, #tpu.memory_space<vmem>>, vector<1x8x16xf32>
    %281 = vector.shape_cast %280 : vector<1x8x16xf32> to vector<8x16xf32>
    %282 = arith.addf %277, %281 : vector<8x16xf32>
    %c2_i32_160 = arith.constant 2 : i32
    %283 = arith.addi %1, %c2_i32_160 : i32
    %c3_161 = arith.constant 3 : index
    %284 = arith.index_cast %283 : i32 to index
    %c0_162 = arith.constant 0 : index
    %285 = vector.load %arg1[%c3_161, %284, %c0_162] : memref<4x19x19xf32, #tpu.memory_space<vmem>>, vector<1x8x16xf32>
    %286 = vector.shape_cast %285 : vector<1x8x16xf32> to vector<8x16xf32>
    %287 = arith.addf %282, %286 : vector<8x16xf32>
    %c2_i32_163 = arith.constant 2 : i32
    %288 = arith.addi %1, %c2_i32_163 : i32
    %c3_164 = arith.constant 3 : index
    %289 = arith.index_cast %288 : i32 to index
    %c1_165 = arith.constant 1 : index
    %290 = vector.load %arg1[%c3_164, %289, %c1_165] : memref<4x19x19xf32, #tpu.memory_space<vmem>>, vector<1x8x16xf32>
    %291 = vector.shape_cast %290 : vector<1x8x16xf32> to vector<8x16xf32>
    %292 = arith.addf %287, %291 : vector<8x16xf32>
    %c2_i32_166 = arith.constant 2 : i32
    %293 = arith.addi %1, %c2_i32_166 : i32
    %c3_167 = arith.constant 3 : index
    %294 = arith.index_cast %293 : i32 to index
    %c2_168 = arith.constant 2 : index
    %295 = vector.load %arg1[%c3_167, %294, %c2_168] : memref<4x19x19xf32, #tpu.memory_space<vmem>>, vector<1x8x16xf32>
    %296 = vector.shape_cast %295 : vector<1x8x16xf32> to vector<8x16xf32>
    %297 = arith.addf %292, %296 : vector<8x16xf32>
    %c2_i32_169 = arith.constant 2 : i32
    %298 = arith.addi %1, %c2_i32_169 : i32
    %c3_170 = arith.constant 3 : index
    %299 = arith.index_cast %298 : i32 to index
    %c3_171 = arith.constant 3 : index
    %300 = vector.load %arg1[%c3_170, %299, %c3_171] : memref<4x19x19xf32, #tpu.memory_space<vmem>>, vector<1x8x16xf32>
    %301 = vector.shape_cast %300 : vector<1x8x16xf32> to vector<8x16xf32>
    %302 = arith.addf %297, %301 : vector<8x16xf32>
    %c3_i32_172 = arith.constant 3 : i32
    %303 = arith.addi %1, %c3_i32_172 : i32
    %c3_173 = arith.constant 3 : index
    %304 = arith.index_cast %303 : i32 to index
    %c0_174 = arith.constant 0 : index
    %305 = vector.load %arg1[%c3_173, %304, %c0_174] : memref<4x19x19xf32, #tpu.memory_space<vmem>>, vector<1x8x16xf32>
    %306 = vector.shape_cast %305 : vector<1x8x16xf32> to vector<8x16xf32>
    %307 = arith.addf %302, %306 : vector<8x16xf32>
    %c3_i32_175 = arith.constant 3 : i32
    %308 = arith.addi %1, %c3_i32_175 : i32
    %c3_176 = arith.constant 3 : index
    %309 = arith.index_cast %308 : i32 to index
    %c1_177 = arith.constant 1 : index
    %310 = vector.load %arg1[%c3_176, %309, %c1_177] : memref<4x19x19xf32, #tpu.memory_space<vmem>>, vector<1x8x16xf32>
    %311 = vector.shape_cast %310 : vector<1x8x16xf32> to vector<8x16xf32>
    %312 = arith.addf %307, %311 : vector<8x16xf32>
    %c3_i32_178 = arith.constant 3 : i32
    %313 = arith.addi %1, %c3_i32_178 : i32
    %c3_179 = arith.constant 3 : index
    %314 = arith.index_cast %313 : i32 to index
    %c2_180 = arith.constant 2 : index
    %315 = vector.load %arg1[%c3_179, %314, %c2_180] : memref<4x19x19xf32, #tpu.memory_space<vmem>>, vector<1x8x16xf32>
    %316 = vector.shape_cast %315 : vector<1x8x16xf32> to vector<8x16xf32>
    %317 = arith.addf %312, %316 : vector<8x16xf32>
    %c3_i32_181 = arith.constant 3 : i32
    %318 = arith.addi %1, %c3_i32_181 : i32
    %c3_182 = arith.constant 3 : index
    %319 = arith.index_cast %318 : i32 to index
    %c3_183 = arith.constant 3 : index
    %320 = vector.load %arg1[%c3_182, %319, %c3_183] : memref<4x19x19xf32, #tpu.memory_space<vmem>>, vector<1x8x16xf32>
    %321 = vector.shape_cast %320 : vector<1x8x16xf32> to vector<8x16xf32>
    %322 = arith.addf %317, %321 : vector<8x16xf32>
    %cst_184 = arith.constant 1.562500e-02 : f32
    %323 = vector.broadcast %cst_184 : f32 to vector<8x16xf32>
    %324 = arith.mulf %322, %323 : vector<8x16xf32>
    %c0_i32_185 = arith.constant 0 : i32
    %325 = arith.addi %1, %c0_i32_185 : i32
    %c0_186 = arith.constant 0 : index
    %326 = arith.index_cast %325 : i32 to index
    %c0_187 = arith.constant 0 : index
    %327 = vector.load %arg1[%c0_186, %326, %c0_187] : memref<4x19x19xf32, #tpu.memory_space<vmem>>, vector<1x8x16xf32>
    %328 = vector.shape_cast %327 : vector<1x8x16xf32> to vector<8x16xf32>
    %329 = arith.subf %328, %324 : vector<8x16xf32>
    %c0_188 = arith.constant 0 : index
    %c0_189 = arith.constant 0 : index
    %c0_190 = arith.constant 0 : index
    %330 = vector.load %arg2[%c0_188, %c0_189, %c0_190] : memref<64x8x16xf32, #tpu.memory_space<vmem>>, vector<1x8x16xf32>
    %331 = vector.shape_cast %330 : vector<1x8x16xf32> to vector<8x16xf32>
    %332 = vector.shape_cast %329 : vector<8x16xf32> to vector<1x8x16xf32>
    tpu.vector_store %arg2[%c0_188, %c0_189, %c0_190], %332 {strides = array<i32>} : memref<64x8x16xf32, #tpu.memory_space<vmem>>, vector<1x8x16xf32>,
    %c0_i32_191 = arith.constant 0 : i32
    %333 = arith.addi %1, %c0_i32_191 : i32
    %c0_192 = arith.constant 0 : index
    %334 = arith.index_cast %333 : i32 to index
    %c1_193 = arith.constant 1 : index
    %335 = vector.load %arg1[%c0_192, %334, %c1_193] : memref<4x19x19xf32, #tpu.memory_space<vmem>>, vector<1x8x16xf32>
    %336 = vector.shape_cast %335 : vector<1x8x16xf32> to vector<8x16xf32>
    %337 = arith.subf %336, %324 : vector<8x16xf32>
    %c1_194 = arith.constant 1 : index
    %c0_195 = arith.constant 0 : index
    %c0_196 = arith.constant 0 : index
    %338 = vector.load %arg2[%c1_194, %c0_195, %c0_196] : memref<64x8x16xf32, #tpu.memory_space<vmem>>, vector<1x8x16xf32>
    %339 = vector.shape_cast %338 : vector<1x8x16xf32> to vector<8x16xf32>
    %340 = vector.shape_cast %337 : vector<8x16xf32> to vector<1x8x16xf32>
    tpu.vector_store %arg2[%c1_194, %c0_195, %c0_196], %340 {strides = array<i32>} : memref<64x8x16xf32, #tpu.memory_space<vmem>>, vector<1x8x16xf32>,
    %c0_i32_197 = arith.constant 0 : i32
    %341 = arith.addi %1, %c0_i32_197 : i32
    %c0_198 = arith.constant 0 : index
    %342 = arith.index_cast %341 : i32 to index
    %c2_199 = arith.constant 2 : index
    %343 = vector.load %arg1[%c0_198, %342, %c2_199] : memref<4x19x19xf32, #tpu.memory_space<vmem>>, vector<1x8x16xf32>
    %344 = vector.shape_cast %343 : vector<1x8x16xf32> to vector<8x16xf32>
    %345 = arith.subf %344, %324 : vector<8x16xf32>
    %c2_200 = arith.constant 2 : index
    %c0_201 = arith.constant 0 : index
    %c0_202 = arith.constant 0 : index
    %346 = vector.load %arg2[%c2_200, %c0_201, %c0_202] : memref<64x8x16xf32, #tpu.memory_space<vmem>>, vector<1x8x16xf32>
    %347 = vector.shape_cast %346 : vector<1x8x16xf32> to vector<8x16xf32>
    %348 = vector.shape_cast %345 : vector<8x16xf32> to vector<1x8x16xf32>
    tpu.vector_store %arg2[%c2_200, %c0_201, %c0_202], %348 {strides = array<i32>} : memref<64x8x16xf32, #tpu.memory_space<vmem>>, vector<1x8x16xf32>,
    %c0_i32_203 = arith.constant 0 : i32
    %349 = arith.addi %1, %c0_i32_203 : i32
    %c0_204 = arith.constant 0 : index
    %350 = arith.index_cast %349 : i32 to index
    %c3_205 = arith.constant 3 : index
    %351 = vector.load %arg1[%c0_204, %350, %c3_205] : memref<4x19x19xf32, #tpu.memory_space<vmem>>, vector<1x8x16xf32>
    %352 = vector.shape_cast %351 : vector<1x8x16xf32> to vector<8x16xf32>
    %353 = arith.subf %352, %324 : vector<8x16xf32>
    %c3_206 = arith.constant 3 : index
    %c0_207 = arith.constant 0 : index
    %c0_208 = arith.constant 0 : index
    %354 = vector.load %arg2[%c3_206, %c0_207, %c0_208] : memref<64x8x16xf32, #tpu.memory_space<vmem>>, vector<1x8x16xf32>
    %355 = vector.shape_cast %354 : vector<1x8x16xf32> to vector<8x16xf32>
    %356 = vector.shape_cast %353 : vector<8x16xf32> to vector<1x8x16xf32>
    tpu.vector_store %arg2[%c3_206, %c0_207, %c0_208], %356 {strides = array<i32>} : memref<64x8x16xf32, #tpu.memory_space<vmem>>, vector<1x8x16xf32>,
    %c1_i32_209 = arith.constant 1 : i32
    %357 = arith.addi %1, %c1_i32_209 : i32
    %c0_210 = arith.constant 0 : index
    %358 = arith.index_cast %357 : i32 to index
    %c0_211 = arith.constant 0 : index
    %359 = vector.load %arg1[%c0_210, %358, %c0_211] : memref<4x19x19xf32, #tpu.memory_space<vmem>>, vector<1x8x16xf32>
    %360 = vector.shape_cast %359 : vector<1x8x16xf32> to vector<8x16xf32>
    %361 = arith.subf %360, %324 : vector<8x16xf32>
    %c4 = arith.constant 4 : index
    %c0_212 = arith.constant 0 : index
    %c0_213 = arith.constant 0 : index
    %362 = vector.load %arg2[%c4, %c0_212, %c0_213] : memref<64x8x16xf32, #tpu.memory_space<vmem>>, vector<1x8x16xf32>
    %363 = vector.shape_cast %362 : vector<1x8x16xf32> to vector<8x16xf32>
    %364 = vector.shape_cast %361 : vector<8x16xf32> to vector<1x8x16xf32>
    tpu.vector_store %arg2[%c4, %c0_212, %c0_213], %364 {strides = array<i32>} : memref<64x8x16xf32, #tpu.memory_space<vmem>>, vector<1x8x16xf32>,
    %c1_i32_214 = arith.constant 1 : i32
    %365 = arith.addi %1, %c1_i32_214 : i32
    %c0_215 = arith.constant 0 : index
    %366 = arith.index_cast %365 : i32 to index
    %c1_216 = arith.constant 1 : index
    %367 = vector.load %arg1[%c0_215, %366, %c1_216] : memref<4x19x19xf32, #tpu.memory_space<vmem>>, vector<1x8x16xf32>
    %368 = vector.shape_cast %367 : vector<1x8x16xf32> to vector<8x16xf32>
    %369 = arith.subf %368, %324 : vector<8x16xf32>
    %c5 = arith.constant 5 : index
    %c0_217 = arith.constant 0 : index
    %c0_218 = arith.constant 0 : index
    %370 = vector.load %arg2[%c5, %c0_217, %c0_218] : memref<64x8x16xf32, #tpu.memory_space<vmem>>, vector<1x8x16xf32>
    %371 = vector.shape_cast %370 : vector<1x8x16xf32> to vector<8x16xf32>
    %372 = vector.shape_cast %369 : vector<8x16xf32> to vector<1x8x16xf32>
    tpu.vector_store %arg2[%c5, %c0_217, %c0_218], %372 {strides = array<i32>} : memref<64x8x16xf32, #tpu.memory_space<vmem>>, vector<1x8x16xf32>,
    %c1_i32_219 = arith.constant 1 : i32
    %373 = arith.addi %1, %c1_i32_219 : i32
    %c0_220 = arith.constant 0 : index
    %374 = arith.index_cast %373 : i32 to index
    %c2_221 = arith.constant 2 : index
    %375 = vector.load %arg1[%c0_220, %374, %c2_221] : memref<4x19x19xf32, #tpu.memory_space<vmem>>, vector<1x8x16xf32>
    %376 = vector.shape_cast %375 : vector<1x8x16xf32> to vector<8x16xf32>
    %377 = arith.subf %376, %324 : vector<8x16xf32>
    %c6 = arith.constant 6 : index
    %c0_222 = arith.constant 0 : index
    %c0_223 = arith.constant 0 : index
    %378 = vector.load %arg2[%c6, %c0_222, %c0_223] : memref<64x8x16xf32, #tpu.memory_space<vmem>>, vector<1x8x16xf32>
    %379 = vector.shape_cast %378 : vector<1x8x16xf32> to vector<8x16xf32>
    %380 = vector.shape_cast %377 : vector<8x16xf32> to vector<1x8x16xf32>
    tpu.vector_store %arg2[%c6, %c0_222, %c0_223], %380 {strides = array<i32>} : memref<64x8x16xf32, #tpu.memory_space<vmem>>, vector<1x8x16xf32>,
    %c1_i32_224 = arith.constant 1 : i32
    %381 = arith.addi %1, %c1_i32_224 : i32
    %c0_225 = arith.constant 0 : index
    %382 = arith.index_cast %381 : i32 to index
    %c3_226 = arith.constant 3 : index
    %383 = vector.load %arg1[%c0_225, %382, %c3_226] : memref<4x19x19xf32, #tpu.memory_space<vmem>>, vector<1x8x16xf32>
    %384 = vector.shape_cast %383 : vector<1x8x16xf32> to vector<8x16xf32>
    %385 = arith.subf %384, %324 : vector<8x16xf32>
    %c7 = arith.constant 7 : index
    %c0_227 = arith.constant 0 : index
    %c0_228 = arith.constant 0 : index
    %386 = vector.load %arg2[%c7, %c0_227, %c0_228] : memref<64x8x16xf32, #tpu.memory_space<vmem>>, vector<1x8x16xf32>
    %387 = vector.shape_cast %386 : vector<1x8x16xf32> to vector<8x16xf32>
    %388 = vector.shape_cast %385 : vector<8x16xf32> to vector<1x8x16xf32>
    tpu.vector_store %arg2[%c7, %c0_227, %c0_228], %388 {strides = array<i32>} : memref<64x8x16xf32, #tpu.memory_space<vmem>>, vector<1x8x16xf32>,
    %c2_i32_229 = arith.constant 2 : i32
    %389 = arith.addi %1, %c2_i32_229 : i32
    %c0_230 = arith.constant 0 : index
    %390 = arith.index_cast %389 : i32 to index
    %c0_231 = arith.constant 0 : index
    %391 = vector.load %arg1[%c0_230, %390, %c0_231] : memref<4x19x19xf32, #tpu.memory_space<vmem>>, vector<1x8x16xf32>
    %392 = vector.shape_cast %391 : vector<1x8x16xf32> to vector<8x16xf32>
    %393 = arith.subf %392, %324 : vector<8x16xf32>
    %c8 = arith.constant 8 : index
    %c0_232 = arith.constant 0 : index
    %c0_233 = arith.constant 0 : index
    %394 = vector.load %arg2[%c8, %c0_232, %c0_233] : memref<64x8x16xf32, #tpu.memory_space<vmem>>, vector<1x8x16xf32>
    %395 = vector.shape_cast %394 : vector<1x8x16xf32> to vector<8x16xf32>
    %396 = vector.shape_cast %393 : vector<8x16xf32> to vector<1x8x16xf32>
    tpu.vector_store %arg2[%c8, %c0_232, %c0_233], %396 {strides = array<i32>} : memref<64x8x16xf32, #tpu.memory_space<vmem>>, vector<1x8x16xf32>,
    %c2_i32_234 = arith.constant 2 : i32
    %397 = arith.addi %1, %c2_i32_234 : i32
    %c0_235 = arith.constant 0 : index
    %398 = arith.index_cast %397 : i32 to index
    %c1_236 = arith.constant 1 : index
    %399 = vector.load %arg1[%c0_235, %398, %c1_236] : memref<4x19x19xf32, #tpu.memory_space<vmem>>, vector<1x8x16xf32>
    %400 = vector.shape_cast %399 : vector<1x8x16xf32> to vector<8x16xf32>
    %401 = arith.subf %400, %324 : vector<8x16xf32>
    %c9 = arith.constant 9 : index
    %c0_237 = arith.constant 0 : index
    %c0_238 = arith.constant 0 : index
    %402 = vector.load %arg2[%c9, %c0_237, %c0_238] : memref<64x8x16xf32, #tpu.memory_space<vmem>>, vector<1x8x16xf32>
    %403 = vector.shape_cast %402 : vector<1x8x16xf32> to vector<8x16xf32>
    %404 = vector.shape_cast %401 : vector<8x16xf32> to vector<1x8x16xf32>
    tpu.vector_store %arg2[%c9, %c0_237, %c0_238], %404 {strides = array<i32>} : memref<64x8x16xf32, #tpu.memory_space<vmem>>, vector<1x8x16xf32>,
    %c2_i32_239 = arith.constant 2 : i32
    %405 = arith.addi %1, %c2_i32_239 : i32
    %c0_240 = arith.constant 0 : index
    %406 = arith.index_cast %405 : i32 to index
    %c2_241 = arith.constant 2 : index
    %407 = vector.load %arg1[%c0_240, %406, %c2_241] : memref<4x19x19xf32, #tpu.memory_space<vmem>>, vector<1x8x16xf32>
    %408 = vector.shape_cast %407 : vector<1x8x16xf32> to vector<8x16xf32>
    %409 = arith.subf %408, %324 : vector<8x16xf32>
    %c10 = arith.constant 10 : index
    %c0_242 = arith.constant 0 : index
    %c0_243 = arith.constant 0 : index
    %410 = vector.load %arg2[%c10, %c0_242, %c0_243] : memref<64x8x16xf32, #tpu.memory_space<vmem>>, vector<1x8x16xf32>
    %411 = vector.shape_cast %410 : vector<1x8x16xf32> to vector<8x16xf32>
    %412 = vector.shape_cast %409 : vector<8x16xf32> to vector<1x8x16xf32>
    tpu.vector_store %arg2[%c10, %c0_242, %c0_243], %412 {strides = array<i32>} : memref<64x8x16xf32, #tpu.memory_space<vmem>>, vector<1x8x16xf32>,
    %c2_i32_244 = arith.constant 2 : i32
    %413 = arith.addi %1, %c2_i32_244 : i32
    %c0_245 = arith.constant 0 : index
    %414 = arith.index_cast %413 : i32 to index
    %c3_246 = arith.constant 3 : index
    %415 = vector.load %arg1[%c0_245, %414, %c3_246] : memref<4x19x19xf32, #tpu.memory_space<vmem>>, vector<1x8x16xf32>
    %416 = vector.shape_cast %415 : vector<1x8x16xf32> to vector<8x16xf32>
    %417 = arith.subf %416, %324 : vector<8x16xf32>
    %c11 = arith.constant 11 : index
    %c0_247 = arith.constant 0 : index
    %c0_248 = arith.constant 0 : index
    %418 = vector.load %arg2[%c11, %c0_247, %c0_248] : memref<64x8x16xf32, #tpu.memory_space<vmem>>, vector<1x8x16xf32>
    %419 = vector.shape_cast %418 : vector<1x8x16xf32> to vector<8x16xf32>
    %420 = vector.shape_cast %417 : vector<8x16xf32> to vector<1x8x16xf32>
    tpu.vector_store %arg2[%c11, %c0_247, %c0_248], %420 {strides = array<i32>} : memref<64x8x16xf32, #tpu.memory_space<vmem>>, vector<1x8x16xf32>,
    %c3_i32_249 = arith.constant 3 : i32
    %421 = arith.addi %1, %c3_i32_249 : i32
    %c0_250 = arith.constant 0 : index
    %422 = arith.index_cast %421 : i32 to index
    %c0_251 = arith.constant 0 : index
    %423 = vector.load %arg1[%c0_250, %422, %c0_251] : memref<4x19x19xf32, #tpu.memory_space<vmem>>, vector<1x8x16xf32>
    %424 = vector.shape_cast %423 : vector<1x8x16xf32> to vector<8x16xf32>
    %425 = arith.subf %424, %324 : vector<8x16xf32>
    %c12 = arith.constant 12 : index
    %c0_252 = arith.constant 0 : index
    %c0_253 = arith.constant 0 : index
    %426 = vector.load %arg2[%c12, %c0_252, %c0_253] : memref<64x8x16xf32, #tpu.memory_space<vmem>>, vector<1x8x16xf32>
    %427 = vector.shape_cast %426 : vector<1x8x16xf32> to vector<8x16xf32>
    %428 = vector.shape_cast %425 : vector<8x16xf32> to vector<1x8x16xf32>
    tpu.vector_store %arg2[%c12, %c0_252, %c0_253], %428 {strides = array<i32>} : memref<64x8x16xf32, #tpu.memory_space<vmem>>, vector<1x8x16xf32>,
    %c3_i32_254 = arith.constant 3 : i32
    %429 = arith.addi %1, %c3_i32_254 : i32
    %c0_255 = arith.constant 0 : index
    %430 = arith.index_cast %429 : i32 to index
    %c1_256 = arith.constant 1 : index
    %431 = vector.load %arg1[%c0_255, %430, %c1_256] : memref<4x19x19xf32, #tpu.memory_space<vmem>>, vector<1x8x16xf32>
    %432 = vector.shape_cast %431 : vector<1x8x16xf32> to vector<8x16xf32>
    %433 = arith.subf %432, %324 : vector<8x16xf32>
    %c13 = arith.constant 13 : index
    %c0_257 = arith.constant 0 : index
    %c0_258 = arith.constant 0 : index
    %434 = vector.load %arg2[%c13, %c0_257, %c0_258] : memref<64x8x16xf32, #tpu.memory_space<vmem>>, vector<1x8x16xf32>
    %435 = vector.shape_cast %434 : vector<1x8x16xf32> to vector<8x16xf32>
    %436 = vector.shape_cast %433 : vector<8x16xf32> to vector<1x8x16xf32>
    tpu.vector_store %arg2[%c13, %c0_257, %c0_258], %436 {strides = array<i32>} : memref<64x8x16xf32, #tpu.memory_space<vmem>>, vector<1x8x16xf32>,
    %c3_i32_259 = arith.constant 3 : i32
    %437 = arith.addi %1, %c3_i32_259 : i32
    %c0_260 = arith.constant 0 : index
    %438 = arith.index_cast %437 : i32 to index
    %c2_261 = arith.constant 2 : index
    %439 = vector.load %arg1[%c0_260, %438, %c2_261] : memref<4x19x19xf32, #tpu.memory_space<vmem>>, vector<1x8x16xf32>
    %440 = vector.shape_cast %439 : vector<1x8x16xf32> to vector<8x16xf32>
    %441 = arith.subf %440, %324 : vector<8x16xf32>
    %c14 = arith.constant 14 : index
    %c0_262 = arith.constant 0 : index
    %c0_263 = arith.constant 0 : index
    %442 = vector.load %arg2[%c14, %c0_262, %c0_263] : memref<64x8x16xf32, #tpu.memory_space<vmem>>, vector<1x8x16xf32>
    %443 = vector.shape_cast %442 : vector<1x8x16xf32> to vector<8x16xf32>
    %444 = vector.shape_cast %441 : vector<8x16xf32> to vector<1x8x16xf32>
    tpu.vector_store %arg2[%c14, %c0_262, %c0_263], %444 {strides = array<i32>} : memref<64x8x16xf32, #tpu.memory_space<vmem>>, vector<1x8x16xf32>,
    %c3_i32_264 = arith.constant 3 : i32
    %445 = arith.addi %1, %c3_i32_264 : i32
    %c0_265 = arith.constant 0 : index
    %446 = arith.index_cast %445 : i32 to index
    %c3_266 = arith.constant 3 : index
    %447 = vector.load %arg1[%c0_265, %446, %c3_266] : memref<4x19x19xf32, #tpu.memory_space<vmem>>, vector<1x8x16xf32>
    %448 = vector.shape_cast %447 : vector<1x8x16xf32> to vector<8x16xf32>
    %449 = arith.subf %448, %324 : vector<8x16xf32>
    %c15 = arith.constant 15 : index
    %c0_267 = arith.constant 0 : index
    %c0_268 = arith.constant 0 : index
    %450 = vector.load %arg2[%c15, %c0_267, %c0_268] : memref<64x8x16xf32, #tpu.memory_space<vmem>>, vector<1x8x16xf32>
    %451 = vector.shape_cast %450 : vector<1x8x16xf32> to vector<8x16xf32>
    %452 = vector.shape_cast %449 : vector<8x16xf32> to vector<1x8x16xf32>
    tpu.vector_store %arg2[%c15, %c0_267, %c0_268], %452 {strides = array<i32>} : memref<64x8x16xf32, #tpu.memory_space<vmem>>, vector<1x8x16xf32>,
    %c0_i32_269 = arith.constant 0 : i32
    %453 = arith.addi %1, %c0_i32_269 : i32
    %c1_270 = arith.constant 1 : index
    %454 = arith.index_cast %453 : i32 to index
    %c0_271 = arith.constant 0 : index
    %455 = vector.load %arg1[%c1_270, %454, %c0_271] : memref<4x19x19xf32, #tpu.memory_space<vmem>>, vector<1x8x16xf32>
    %456 = vector.shape_cast %455 : vector<1x8x16xf32> to vector<8x16xf32>
    %457 = arith.subf %456, %324 : vector<8x16xf32>
    %c16 = arith.constant 16 : index
    %c0_272 = arith.constant 0 : index
    %c0_273 = arith.constant 0 : index
    %458 = vector.load %arg2[%c16, %c0_272, %c0_273] : memref<64x8x16xf32, #tpu.memory_space<vmem>>, vector<1x8x16xf32>
    %459 = vector.shape_cast %458 : vector<1x8x16xf32> to vector<8x16xf32>
    %460 = vector.shape_cast %457 : vector<8x16xf32> to vector<1x8x16xf32>
    tpu.vector_store %arg2[%c16, %c0_272, %c0_273], %460 {strides = array<i32>} : memref<64x8x16xf32, #tpu.memory_space<vmem>>, vector<1x8x16xf32>,
    %c0_i32_274 = arith.constant 0 : i32
    %461 = arith.addi %1, %c0_i32_274 : i32
    %c1_275 = arith.constant 1 : index
    %462 = arith.index_cast %461 : i32 to index
    %c1_276 = arith.constant 1 : index
    %463 = vector.load %arg1[%c1_275, %462, %c1_276] : memref<4x19x19xf32, #tpu.memory_space<vmem>>, vector<1x8x16xf32>
    %464 = vector.shape_cast %463 : vector<1x8x16xf32> to vector<8x16xf32>
    %465 = arith.subf %464, %324 : vector<8x16xf32>
    %c17 = arith.constant 17 : index
    %c0_277 = arith.constant 0 : index
    %c0_278 = arith.constant 0 : index
    %466 = vector.load %arg2[%c17, %c0_277, %c0_278] : memref<64x8x16xf32, #tpu.memory_space<vmem>>, vector<1x8x16xf32>
    %467 = vector.shape_cast %466 : vector<1x8x16xf32> to vector<8x16xf32>
    %468 = vector.shape_cast %465 : vector<8x16xf32> to vector<1x8x16xf32>
    tpu.vector_store %arg2[%c17, %c0_277, %c0_278], %468 {strides = array<i32>} : memref<64x8x16xf32, #tpu.memory_space<vmem>>, vector<1x8x16xf32>,
    %c0_i32_279 = arith.constant 0 : i32
    %469 = arith.addi %1, %c0_i32_279 : i32
    %c1_280 = arith.constant 1 : index
    %470 = arith.index_cast %469 : i32 to index
    %c2_281 = arith.constant 2 : index
    %471 = vector.load %arg1[%c1_280, %470, %c2_281] : memref<4x19x19xf32, #tpu.memory_space<vmem>>, vector<1x8x16xf32>
    %472 = vector.shape_cast %471 : vector<1x8x16xf32> to vector<8x16xf32>
    %473 = arith.subf %472, %324 : vector<8x16xf32>
    %c18 = arith.constant 18 : index
    %c0_282 = arith.constant 0 : index
    %c0_283 = arith.constant 0 : index
    %474 = vector.load %arg2[%c18, %c0_282, %c0_283] : memref<64x8x16xf32, #tpu.memory_space<vmem>>, vector<1x8x16xf32>
    %475 = vector.shape_cast %474 : vector<1x8x16xf32> to vector<8x16xf32>
    %476 = vector.shape_cast %473 : vector<8x16xf32> to vector<1x8x16xf32>
    tpu.vector_store %arg2[%c18, %c0_282, %c0_283], %476 {strides = array<i32>} : memref<64x8x16xf32, #tpu.memory_space<vmem>>, vector<1x8x16xf32>,
    %c0_i32_284 = arith.constant 0 : i32
    %477 = arith.addi %1, %c0_i32_284 : i32
    %c1_285 = arith.constant 1 : index
    %478 = arith.index_cast %477 : i32 to index
    %c3_286 = arith.constant 3 : index
    %479 = vector.load %arg1[%c1_285, %478, %c3_286] : memref<4x19x19xf32, #tpu.memory_space<vmem>>, vector<1x8x16xf32>
    %480 = vector.shape_cast %479 : vector<1x8x16xf32> to vector<8x16xf32>
    %481 = arith.subf %480, %324 : vector<8x16xf32>
    %c19 = arith.constant 19 : index
    %c0_287 = arith.constant 0 : index
    %c0_288 = arith.constant 0 : index
    %482 = vector.load %arg2[%c19, %c0_287, %c0_288] : memref<64x8x16xf32, #tpu.memory_space<vmem>>, vector<1x8x16xf32>
    %483 = vector.shape_cast %482 : vector<1x8x16xf32> to vector<8x16xf32>
    %484 = vector.shape_cast %481 : vector<8x16xf32> to vector<1x8x16xf32>
    tpu.vector_store %arg2[%c19, %c0_287, %c0_288], %484 {strides = array<i32>} : memref<64x8x16xf32, #tpu.memory_space<vmem>>, vector<1x8x16xf32>,
    %c1_i32_289 = arith.constant 1 : i32
    %485 = arith.addi %1, %c1_i32_289 : i32
    %c1_290 = arith.constant 1 : index
    %486 = arith.index_cast %485 : i32 to index
    %c0_291 = arith.constant 0 : index
    %487 = vector.load %arg1[%c1_290, %486, %c0_291] : memref<4x19x19xf32, #tpu.memory_space<vmem>>, vector<1x8x16xf32>
    %488 = vector.shape_cast %487 : vector<1x8x16xf32> to vector<8x16xf32>
    %489 = arith.subf %488, %324 : vector<8x16xf32>
    %c20 = arith.constant 20 : index
    %c0_292 = arith.constant 0 : index
    %c0_293 = arith.constant 0 : index
    %490 = vector.load %arg2[%c20, %c0_292, %c0_293] : memref<64x8x16xf32, #tpu.memory_space<vmem>>, vector<1x8x16xf32>
    %491 = vector.shape_cast %490 : vector<1x8x16xf32> to vector<8x16xf32>
    %492 = vector.shape_cast %489 : vector<8x16xf32> to vector<1x8x16xf32>
    tpu.vector_store %arg2[%c20, %c0_292, %c0_293], %492 {strides = array<i32>} : memref<64x8x16xf32, #tpu.memory_space<vmem>>, vector<1x8x16xf32>,
    %c1_i32_294 = arith.constant 1 : i32
    %493 = arith.addi %1, %c1_i32_294 : i32
    %c1_295 = arith.constant 1 : index
    %494 = arith.index_cast %493 : i32 to index
    %c1_296 = arith.constant 1 : index
    %495 = vector.load %arg1[%c1_295, %494, %c1_296] : memref<4x19x19xf32, #tpu.memory_space<vmem>>, vector<1x8x16xf32>
    %496 = vector.shape_cast %495 : vector<1x8x16xf32> to vector<8x16xf32>
    %497 = arith.subf %496, %324 : vector<8x16xf32>
    %c21 = arith.constant 21 : index
    %c0_297 = arith.constant 0 : index
    %c0_298 = arith.constant 0 : index
    %498 = vector.load %arg2[%c21, %c0_297, %c0_298] : memref<64x8x16xf32, #tpu.memory_space<vmem>>, vector<1x8x16xf32>
    %499 = vector.shape_cast %498 : vector<1x8x16xf32> to vector<8x16xf32>
    %500 = vector.shape_cast %497 : vector<8x16xf32> to vector<1x8x16xf32>
    tpu.vector_store %arg2[%c21, %c0_297, %c0_298], %500 {strides = array<i32>} : memref<64x8x16xf32, #tpu.memory_space<vmem>>, vector<1x8x16xf32>,
    %c1_i32_299 = arith.constant 1 : i32
    %501 = arith.addi %1, %c1_i32_299 : i32
    %c1_300 = arith.constant 1 : index
    %502 = arith.index_cast %501 : i32 to index
    %c2_301 = arith.constant 2 : index
    %503 = vector.load %arg1[%c1_300, %502, %c2_301] : memref<4x19x19xf32, #tpu.memory_space<vmem>>, vector<1x8x16xf32>
    %504 = vector.shape_cast %503 : vector<1x8x16xf32> to vector<8x16xf32>
    %505 = arith.subf %504, %324 : vector<8x16xf32>
    %c22 = arith.constant 22 : index
    %c0_302 = arith.constant 0 : index
    %c0_303 = arith.constant 0 : index
    %506 = vector.load %arg2[%c22, %c0_302, %c0_303] : memref<64x8x16xf32, #tpu.memory_space<vmem>>, vector<1x8x16xf32>
    %507 = vector.shape_cast %506 : vector<1x8x16xf32> to vector<8x16xf32>
    %508 = vector.shape_cast %505 : vector<8x16xf32> to vector<1x8x16xf32>
    tpu.vector_store %arg2[%c22, %c0_302, %c0_303], %508 {strides = array<i32>} : memref<64x8x16xf32, #tpu.memory_space<vmem>>, vector<1x8x16xf32>,
    %c1_i32_304 = arith.constant 1 : i32
    %509 = arith.addi %1, %c1_i32_304 : i32
    %c1_305 = arith.constant 1 : index
    %510 = arith.index_cast %509 : i32 to index
    %c3_306 = arith.constant 3 : index
    %511 = vector.load %arg1[%c1_305, %510, %c3_306] : memref<4x19x19xf32, #tpu.memory_space<vmem>>, vector<1x8x16xf32>
    %512 = vector.shape_cast %511 : vector<1x8x16xf32> to vector<8x16xf32>
    %513 = arith.subf %512, %324 : vector<8x16xf32>
    %c23 = arith.constant 23 : index
    %c0_307 = arith.constant 0 : index
    %c0_308 = arith.constant 0 : index
    %514 = vector.load %arg2[%c23, %c0_307, %c0_308] : memref<64x8x16xf32, #tpu.memory_space<vmem>>, vector<1x8x16xf32>
    %515 = vector.shape_cast %514 : vector<1x8x16xf32> to vector<8x16xf32>
    %516 = vector.shape_cast %513 : vector<8x16xf32> to vector<1x8x16xf32>
    tpu.vector_store %arg2[%c23, %c0_307, %c0_308], %516 {strides = array<i32>} : memref<64x8x16xf32, #tpu.memory_space<vmem>>, vector<1x8x16xf32>,
    %c2_i32_309 = arith.constant 2 : i32
    %517 = arith.addi %1, %c2_i32_309 : i32
    %c1_310 = arith.constant 1 : index
    %518 = arith.index_cast %517 : i32 to index
    %c0_311 = arith.constant 0 : index
    %519 = vector.load %arg1[%c1_310, %518, %c0_311] : memref<4x19x19xf32, #tpu.memory_space<vmem>>, vector<1x8x16xf32>
    %520 = vector.shape_cast %519 : vector<1x8x16xf32> to vector<8x16xf32>
    %521 = arith.subf %520, %324 : vector<8x16xf32>
    %c24 = arith.constant 24 : index
    %c0_312 = arith.constant 0 : index
    %c0_313 = arith.constant 0 : index
    %522 = vector.load %arg2[%c24, %c0_312, %c0_313] : memref<64x8x16xf32, #tpu.memory_space<vmem>>, vector<1x8x16xf32>
    %523 = vector.shape_cast %522 : vector<1x8x16xf32> to vector<8x16xf32>
    %524 = vector.shape_cast %521 : vector<8x16xf32> to vector<1x8x16xf32>
    tpu.vector_store %arg2[%c24, %c0_312, %c0_313], %524 {strides = array<i32>} : memref<64x8x16xf32, #tpu.memory_space<vmem>>, vector<1x8x16xf32>,
    %c2_i32_314 = arith.constant 2 : i32
    %525 = arith.addi %1, %c2_i32_314 : i32
    %c1_315 = arith.constant 1 : index
    %526 = arith.index_cast %525 : i32 to index
    %c1_316 = arith.constant 1 : index
    %527 = vector.load %arg1[%c1_315, %526, %c1_316] : memref<4x19x19xf32, #tpu.memory_space<vmem>>, vector<1x8x16xf32>
    %528 = vector.shape_cast %527 : vector<1x8x16xf32> to vector<8x16xf32>
    %529 = arith.subf %528, %324 : vector<8x16xf32>
    %c25 = arith.constant 25 : index
    %c0_317 = arith.constant 0 : index
    %c0_318 = arith.constant 0 : index
    %530 = vector.load %arg2[%c25, %c0_317, %c0_318] : memref<64x8x16xf32, #tpu.memory_space<vmem>>, vector<1x8x16xf32>
    %531 = vector.shape_cast %530 : vector<1x8x16xf32> to vector<8x16xf32>
    %532 = vector.shape_cast %529 : vector<8x16xf32> to vector<1x8x16xf32>
    tpu.vector_store %arg2[%c25, %c0_317, %c0_318], %532 {strides = array<i32>} : memref<64x8x16xf32, #tpu.memory_space<vmem>>, vector<1x8x16xf32>,
    %c2_i32_319 = arith.constant 2 : i32
    %533 = arith.addi %1, %c2_i32_319 : i32
    %c1_320 = arith.constant 1 : index
    %534 = arith.index_cast %533 : i32 to index
    %c2_321 = arith.constant 2 : index
    %535 = vector.load %arg1[%c1_320, %534, %c2_321] : memref<4x19x19xf32, #tpu.memory_space<vmem>>, vector<1x8x16xf32>
    %536 = vector.shape_cast %535 : vector<1x8x16xf32> to vector<8x16xf32>
    %537 = arith.subf %536, %324 : vector<8x16xf32>
    %c26 = arith.constant 26 : index
    %c0_322 = arith.constant 0 : index
    %c0_323 = arith.constant 0 : index
    %538 = vector.load %arg2[%c26, %c0_322, %c0_323] : memref<64x8x16xf32, #tpu.memory_space<vmem>>, vector<1x8x16xf32>
    %539 = vector.shape_cast %538 : vector<1x8x16xf32> to vector<8x16xf32>
    %540 = vector.shape_cast %537 : vector<8x16xf32> to vector<1x8x16xf32>
    tpu.vector_store %arg2[%c26, %c0_322, %c0_323], %540 {strides = array<i32>} : memref<64x8x16xf32, #tpu.memory_space<vmem>>, vector<1x8x16xf32>,
    %c2_i32_324 = arith.constant 2 : i32
    %541 = arith.addi %1, %c2_i32_324 : i32
    %c1_325 = arith.constant 1 : index
    %542 = arith.index_cast %541 : i32 to index
    %c3_326 = arith.constant 3 : index
    %543 = vector.load %arg1[%c1_325, %542, %c3_326] : memref<4x19x19xf32, #tpu.memory_space<vmem>>, vector<1x8x16xf32>
    %544 = vector.shape_cast %543 : vector<1x8x16xf32> to vector<8x16xf32>
    %545 = arith.subf %544, %324 : vector<8x16xf32>
    %c27 = arith.constant 27 : index
    %c0_327 = arith.constant 0 : index
    %c0_328 = arith.constant 0 : index
    %546 = vector.load %arg2[%c27, %c0_327, %c0_328] : memref<64x8x16xf32, #tpu.memory_space<vmem>>, vector<1x8x16xf32>
    %547 = vector.shape_cast %546 : vector<1x8x16xf32> to vector<8x16xf32>
    %548 = vector.shape_cast %545 : vector<8x16xf32> to vector<1x8x16xf32>
    tpu.vector_store %arg2[%c27, %c0_327, %c0_328], %548 {strides = array<i32>} : memref<64x8x16xf32, #tpu.memory_space<vmem>>, vector<1x8x16xf32>,
    %c3_i32_329 = arith.constant 3 : i32
    %549 = arith.addi %1, %c3_i32_329 : i32
    %c1_330 = arith.constant 1 : index
    %550 = arith.index_cast %549 : i32 to index
    %c0_331 = arith.constant 0 : index
    %551 = vector.load %arg1[%c1_330, %550, %c0_331] : memref<4x19x19xf32, #tpu.memory_space<vmem>>, vector<1x8x16xf32>
    %552 = vector.shape_cast %551 : vector<1x8x16xf32> to vector<8x16xf32>
    %553 = arith.subf %552, %324 : vector<8x16xf32>
    %c28 = arith.constant 28 : index
    %c0_332 = arith.constant 0 : index
    %c0_333 = arith.constant 0 : index
    %554 = vector.load %arg2[%c28, %c0_332, %c0_333] : memref<64x8x16xf32, #tpu.memory_space<vmem>>, vector<1x8x16xf32>
    %555 = vector.shape_cast %554 : vector<1x8x16xf32> to vector<8x16xf32>
    %556 = vector.shape_cast %553 : vector<8x16xf32> to vector<1x8x16xf32>
    tpu.vector_store %arg2[%c28, %c0_332, %c0_333], %556 {strides = array<i32>} : memref<64x8x16xf32, #tpu.memory_space<vmem>>, vector<1x8x16xf32>,
    %c3_i32_334 = arith.constant 3 : i32
    %557 = arith.addi %1, %c3_i32_334 : i32
    %c1_335 = arith.constant 1 : index
    %558 = arith.index_cast %557 : i32 to index
    %c1_336 = arith.constant 1 : index
    %559 = vector.load %arg1[%c1_335, %558, %c1_336] : memref<4x19x19xf32, #tpu.memory_space<vmem>>, vector<1x8x16xf32>
    %560 = vector.shape_cast %559 : vector<1x8x16xf32> to vector<8x16xf32>
    %561 = arith.subf %560, %324 : vector<8x16xf32>
    %c29 = arith.constant 29 : index
    %c0_337 = arith.constant 0 : index
    %c0_338 = arith.constant 0 : index
    %562 = vector.load %arg2[%c29, %c0_337, %c0_338] : memref<64x8x16xf32, #tpu.memory_space<vmem>>, vector<1x8x16xf32>
    %563 = vector.shape_cast %562 : vector<1x8x16xf32> to vector<8x16xf32>
    %564 = vector.shape_cast %561 : vector<8x16xf32> to vector<1x8x16xf32>
    tpu.vector_store %arg2[%c29, %c0_337, %c0_338], %564 {strides = array<i32>} : memref<64x8x16xf32, #tpu.memory_space<vmem>>, vector<1x8x16xf32>,
    %c3_i32_339 = arith.constant 3 : i32
    %565 = arith.addi %1, %c3_i32_339 : i32
    %c1_340 = arith.constant 1 : index
    %566 = arith.index_cast %565 : i32 to index
    %c2_341 = arith.constant 2 : index
    %567 = vector.load %arg1[%c1_340, %566, %c2_341] : memref<4x19x19xf32, #tpu.memory_space<vmem>>, vector<1x8x16xf32>
    %568 = vector.shape_cast %567 : vector<1x8x16xf32> to vector<8x16xf32>
    %569 = arith.subf %568, %324 : vector<8x16xf32>
    %c30 = arith.constant 30 : index
    %c0_342 = arith.constant 0 : index
    %c0_343 = arith.constant 0 : index
    %570 = vector.load %arg2[%c30, %c0_342, %c0_343] : memref<64x8x16xf32, #tpu.memory_space<vmem>>, vector<1x8x16xf32>
    %571 = vector.shape_cast %570 : vector<1x8x16xf32> to vector<8x16xf32>
    %572 = vector.shape_cast %569 : vector<8x16xf32> to vector<1x8x16xf32>
    tpu.vector_store %arg2[%c30, %c0_342, %c0_343], %572 {strides = array<i32>} : memref<64x8x16xf32, #tpu.memory_space<vmem>>, vector<1x8x16xf32>,
    %c3_i32_344 = arith.constant 3 : i32
    %573 = arith.addi %1, %c3_i32_344 : i32
    %c1_345 = arith.constant 1 : index
    %574 = arith.index_cast %573 : i32 to index
    %c3_346 = arith.constant 3 : index
    %575 = vector.load %arg1[%c1_345, %574, %c3_346] : memref<4x19x19xf32, #tpu.memory_space<vmem>>, vector<1x8x16xf32>
    %576 = vector.shape_cast %575 : vector<1x8x16xf32> to vector<8x16xf32>
    %577 = arith.subf %576, %324 : vector<8x16xf32>
    %c31 = arith.constant 31 : index
    %c0_347 = arith.constant 0 : index
    %c0_348 = arith.constant 0 : index
    %578 = vector.load %arg2[%c31, %c0_347, %c0_348] : memref<64x8x16xf32, #tpu.memory_space<vmem>>, vector<1x8x16xf32>
    %579 = vector.shape_cast %578 : vector<1x8x16xf32> to vector<8x16xf32>
    %580 = vector.shape_cast %577 : vector<8x16xf32> to vector<1x8x16xf32>
    tpu.vector_store %arg2[%c31, %c0_347, %c0_348], %580 {strides = array<i32>} : memref<64x8x16xf32, #tpu.memory_space<vmem>>, vector<1x8x16xf32>,
    %c0_i32_349 = arith.constant 0 : i32
    %581 = arith.addi %1, %c0_i32_349 : i32
    %c2_350 = arith.constant 2 : index
    %582 = arith.index_cast %581 : i32 to index
    %c0_351 = arith.constant 0 : index
    %583 = vector.load %arg1[%c2_350, %582, %c0_351] : memref<4x19x19xf32, #tpu.memory_space<vmem>>, vector<1x8x16xf32>
    %584 = vector.shape_cast %583 : vector<1x8x16xf32> to vector<8x16xf32>
    %585 = arith.subf %584, %324 : vector<8x16xf32>
    %c32 = arith.constant 32 : index
    %c0_352 = arith.constant 0 : index
    %c0_353 = arith.constant 0 : index
    %586 = vector.load %arg2[%c32, %c0_352, %c0_353] : memref<64x8x16xf32, #tpu.memory_space<vmem>>, vector<1x8x16xf32>
    %587 = vector.shape_cast %586 : vector<1x8x16xf32> to vector<8x16xf32>
    %588 = vector.shape_cast %585 : vector<8x16xf32> to vector<1x8x16xf32>
    tpu.vector_store %arg2[%c32, %c0_352, %c0_353], %588 {strides = array<i32>} : memref<64x8x16xf32, #tpu.memory_space<vmem>>, vector<1x8x16xf32>,
    %c0_i32_354 = arith.constant 0 : i32
    %589 = arith.addi %1, %c0_i32_354 : i32
    %c2_355 = arith.constant 2 : index
    %590 = arith.index_cast %589 : i32 to index
    %c1_356 = arith.constant 1 : index
    %591 = vector.load %arg1[%c2_355, %590, %c1_356] : memref<4x19x19xf32, #tpu.memory_space<vmem>>, vector<1x8x16xf32>
    %592 = vector.shape_cast %591 : vector<1x8x16xf32> to vector<8x16xf32>
    %593 = arith.subf %592, %324 : vector<8x16xf32>
    %c33 = arith.constant 33 : index
    %c0_357 = arith.constant 0 : index
    %c0_358 = arith.constant 0 : index
    %594 = vector.load %arg2[%c33, %c0_357, %c0_358] : memref<64x8x16xf32, #tpu.memory_space<vmem>>, vector<1x8x16xf32>
    %595 = vector.shape_cast %594 : vector<1x8x16xf32> to vector<8x16xf32>
    %596 = vector.shape_cast %593 : vector<8x16xf32> to vector<1x8x16xf32>
    tpu.vector_store %arg2[%c33, %c0_357, %c0_358], %596 {strides = array<i32>} : memref<64x8x16xf32, #tpu.memory_space<vmem>>, vector<1x8x16xf32>,
    %c0_i32_359 = arith.constant 0 : i32
    %597 = arith.addi %1, %c0_i32_359 : i32
    %c2_360 = arith.constant 2 : index
    %598 = arith.index_cast %597 : i32 to index
    %c2_361 = arith.constant 2 : index
    %599 = vector.load %arg1[%c2_360, %598, %c2_361] : memref<4x19x19xf32, #tpu.memory_space<vmem>>, vector<1x8x16xf32>
    %600 = vector.shape_cast %599 : vector<1x8x16xf32> to vector<8x16xf32>
    %601 = arith.subf %600, %324 : vector<8x16xf32>
    %c34 = arith.constant 34 : index
    %c0_362 = arith.constant 0 : index
    %c0_363 = arith.constant 0 : index
    %602 = vector.load %arg2[%c34, %c0_362, %c0_363] : memref<64x8x16xf32, #tpu.memory_space<vmem>>, vector<1x8x16xf32>
    %603 = vector.shape_cast %602 : vector<1x8x16xf32> to vector<8x16xf32>
    %604 = vector.shape_cast %601 : vector<8x16xf32> to vector<1x8x16xf32>
    tpu.vector_store %arg2[%c34, %c0_362, %c0_363], %604 {strides = array<i32>} : memref<64x8x16xf32, #tpu.memory_space<vmem>>, vector<1x8x16xf32>,
    %c0_i32_364 = arith.constant 0 : i32
    %605 = arith.addi %1, %c0_i32_364 : i32
    %c2_365 = arith.constant 2 : index
    %606 = arith.index_cast %605 : i32 to index
    %c3_366 = arith.constant 3 : index
    %607 = vector.load %arg1[%c2_365, %606, %c3_366] : memref<4x19x19xf32, #tpu.memory_space<vmem>>, vector<1x8x16xf32>
    %608 = vector.shape_cast %607 : vector<1x8x16xf32> to vector<8x16xf32>
    %609 = arith.subf %608, %324 : vector<8x16xf32>
    %c35 = arith.constant 35 : index
    %c0_367 = arith.constant 0 : index
    %c0_368 = arith.constant 0 : index
    %610 = vector.load %arg2[%c35, %c0_367, %c0_368] : memref<64x8x16xf32, #tpu.memory_space<vmem>>, vector<1x8x16xf32>
    %611 = vector.shape_cast %610 : vector<1x8x16xf32> to vector<8x16xf32>
    %612 = vector.shape_cast %609 : vector<8x16xf32> to vector<1x8x16xf32>
    tpu.vector_store %arg2[%c35, %c0_367, %c0_368], %612 {strides = array<i32>} : memref<64x8x16xf32, #tpu.memory_space<vmem>>, vector<1x8x16xf32>,
    %c1_i32_369 = arith.constant 1 : i32
    %613 = arith.addi %1, %c1_i32_369 : i32
    %c2_370 = arith.constant 2 : index
    %614 = arith.index_cast %613 : i32 to index
    %c0_371 = arith.constant 0 : index
    %615 = vector.load %arg1[%c2_370, %614, %c0_371] : memref<4x19x19xf32, #tpu.memory_space<vmem>>, vector<1x8x16xf32>
    %616 = vector.shape_cast %615 : vector<1x8x16xf32> to vector<8x16xf32>
    %617 = arith.subf %616, %324 : vector<8x16xf32>
    %c36 = arith.constant 36 : index
    %c0_372 = arith.constant 0 : index
    %c0_373 = arith.constant 0 : index
    %618 = vector.load %arg2[%c36, %c0_372, %c0_373] : memref<64x8x16xf32, #tpu.memory_space<vmem>>, vector<1x8x16xf32>
    %619 = vector.shape_cast %618 : vector<1x8x16xf32> to vector<8x16xf32>
    %620 = vector.shape_cast %617 : vector<8x16xf32> to vector<1x8x16xf32>
    tpu.vector_store %arg2[%c36, %c0_372, %c0_373], %620 {strides = array<i32>} : memref<64x8x16xf32, #tpu.memory_space<vmem>>, vector<1x8x16xf32>,
    %c1_i32_374 = arith.constant 1 : i32
    %621 = arith.addi %1, %c1_i32_374 : i32
    %c2_375 = arith.constant 2 : index
    %622 = arith.index_cast %621 : i32 to index
    %c1_376 = arith.constant 1 : index
    %623 = vector.load %arg1[%c2_375, %622, %c1_376] : memref<4x19x19xf32, #tpu.memory_space<vmem>>, vector<1x8x16xf32>
    %624 = vector.shape_cast %623 : vector<1x8x16xf32> to vector<8x16xf32>
    %625 = arith.subf %624, %324 : vector<8x16xf32>
    %c37 = arith.constant 37 : index
    %c0_377 = arith.constant 0 : index
    %c0_378 = arith.constant 0 : index
    %626 = vector.load %arg2[%c37, %c0_377, %c0_378] : memref<64x8x16xf32, #tpu.memory_space<vmem>>, vector<1x8x16xf32>
    %627 = vector.shape_cast %626 : vector<1x8x16xf32> to vector<8x16xf32>
    %628 = vector.shape_cast %625 : vector<8x16xf32> to vector<1x8x16xf32>
    tpu.vector_store %arg2[%c37, %c0_377, %c0_378], %628 {strides = array<i32>} : memref<64x8x16xf32, #tpu.memory_space<vmem>>, vector<1x8x16xf32>,
    %c1_i32_379 = arith.constant 1 : i32
    %629 = arith.addi %1, %c1_i32_379 : i32
    %c2_380 = arith.constant 2 : index
    %630 = arith.index_cast %629 : i32 to index
    %c2_381 = arith.constant 2 : index
    %631 = vector.load %arg1[%c2_380, %630, %c2_381] : memref<4x19x19xf32, #tpu.memory_space<vmem>>, vector<1x8x16xf32>
    %632 = vector.shape_cast %631 : vector<1x8x16xf32> to vector<8x16xf32>
    %633 = arith.subf %632, %324 : vector<8x16xf32>
    %c38 = arith.constant 38 : index
    %c0_382 = arith.constant 0 : index
    %c0_383 = arith.constant 0 : index
    %634 = vector.load %arg2[%c38, %c0_382, %c0_383] : memref<64x8x16xf32, #tpu.memory_space<vmem>>, vector<1x8x16xf32>
    %635 = vector.shape_cast %634 : vector<1x8x16xf32> to vector<8x16xf32>
    %636 = vector.shape_cast %633 : vector<8x16xf32> to vector<1x8x16xf32>
    tpu.vector_store %arg2[%c38, %c0_382, %c0_383], %636 {strides = array<i32>} : memref<64x8x16xf32, #tpu.memory_space<vmem>>, vector<1x8x16xf32>,
    %c1_i32_384 = arith.constant 1 : i32
    %637 = arith.addi %1, %c1_i32_384 : i32
    %c2_385 = arith.constant 2 : index
    %638 = arith.index_cast %637 : i32 to index
    %c3_386 = arith.constant 3 : index
    %639 = vector.load %arg1[%c2_385, %638, %c3_386] : memref<4x19x19xf32, #tpu.memory_space<vmem>>, vector<1x8x16xf32>
    %640 = vector.shape_cast %639 : vector<1x8x16xf32> to vector<8x16xf32>
    %641 = arith.subf %640, %324 : vector<8x16xf32>
    %c39 = arith.constant 39 : index
    %c0_387 = arith.constant 0 : index
    %c0_388 = arith.constant 0 : index
    %642 = vector.load %arg2[%c39, %c0_387, %c0_388] : memref<64x8x16xf32, #tpu.memory_space<vmem>>, vector<1x8x16xf32>
    %643 = vector.shape_cast %642 : vector<1x8x16xf32> to vector<8x16xf32>
    %644 = vector.shape_cast %641 : vector<8x16xf32> to vector<1x8x16xf32>
    tpu.vector_store %arg2[%c39, %c0_387, %c0_388], %644 {strides = array<i32>} : memref<64x8x16xf32, #tpu.memory_space<vmem>>, vector<1x8x16xf32>,
    %c2_i32_389 = arith.constant 2 : i32
    %645 = arith.addi %1, %c2_i32_389 : i32
    %c2_390 = arith.constant 2 : index
    %646 = arith.index_cast %645 : i32 to index
    %c0_391 = arith.constant 0 : index
    %647 = vector.load %arg1[%c2_390, %646, %c0_391] : memref<4x19x19xf32, #tpu.memory_space<vmem>>, vector<1x8x16xf32>
    %648 = vector.shape_cast %647 : vector<1x8x16xf32> to vector<8x16xf32>
    %649 = arith.subf %648, %324 : vector<8x16xf32>
    %c40 = arith.constant 40 : index
    %c0_392 = arith.constant 0 : index
    %c0_393 = arith.constant 0 : index
    %650 = vector.load %arg2[%c40, %c0_392, %c0_393] : memref<64x8x16xf32, #tpu.memory_space<vmem>>, vector<1x8x16xf32>
    %651 = vector.shape_cast %650 : vector<1x8x16xf32> to vector<8x16xf32>
    %652 = vector.shape_cast %649 : vector<8x16xf32> to vector<1x8x16xf32>
    tpu.vector_store %arg2[%c40, %c0_392, %c0_393], %652 {strides = array<i32>} : memref<64x8x16xf32, #tpu.memory_space<vmem>>, vector<1x8x16xf32>,
    %c2_i32_394 = arith.constant 2 : i32
    %653 = arith.addi %1, %c2_i32_394 : i32
    %c2_395 = arith.constant 2 : index
    %654 = arith.index_cast %653 : i32 to index
    %c1_396 = arith.constant 1 : index
    %655 = vector.load %arg1[%c2_395, %654, %c1_396] : memref<4x19x19xf32, #tpu.memory_space<vmem>>, vector<1x8x16xf32>
    %656 = vector.shape_cast %655 : vector<1x8x16xf32> to vector<8x16xf32>
    %657 = arith.subf %656, %324 : vector<8x16xf32>
    %c41 = arith.constant 41 : index
    %c0_397 = arith.constant 0 : index
    %c0_398 = arith.constant 0 : index
    %658 = vector.load %arg2[%c41, %c0_397, %c0_398] : memref<64x8x16xf32, #tpu.memory_space<vmem>>, vector<1x8x16xf32>
    %659 = vector.shape_cast %658 : vector<1x8x16xf32> to vector<8x16xf32>
    %660 = vector.shape_cast %657 : vector<8x16xf32> to vector<1x8x16xf32>
    tpu.vector_store %arg2[%c41, %c0_397, %c0_398], %660 {strides = array<i32>} : memref<64x8x16xf32, #tpu.memory_space<vmem>>, vector<1x8x16xf32>,
    %c2_i32_399 = arith.constant 2 : i32
    %661 = arith.addi %1, %c2_i32_399 : i32
    %c2_400 = arith.constant 2 : index
    %662 = arith.index_cast %661 : i32 to index
    %c2_401 = arith.constant 2 : index
    %663 = vector.load %arg1[%c2_400, %662, %c2_401] : memref<4x19x19xf32, #tpu.memory_space<vmem>>, vector<1x8x16xf32>
    %664 = vector.shape_cast %663 : vector<1x8x16xf32> to vector<8x16xf32>
    %665 = arith.subf %664, %324 : vector<8x16xf32>
    %c42 = arith.constant 42 : index
    %c0_402 = arith.constant 0 : index
    %c0_403 = arith.constant 0 : index
    %666 = vector.load %arg2[%c42, %c0_402, %c0_403] : memref<64x8x16xf32, #tpu.memory_space<vmem>>, vector<1x8x16xf32>
    %667 = vector.shape_cast %666 : vector<1x8x16xf32> to vector<8x16xf32>
    %668 = vector.shape_cast %665 : vector<8x16xf32> to vector<1x8x16xf32>
    tpu.vector_store %arg2[%c42, %c0_402, %c0_403], %668 {strides = array<i32>} : memref<64x8x16xf32, #tpu.memory_space<vmem>>, vector<1x8x16xf32>,
    %c2_i32_404 = arith.constant 2 : i32
    %669 = arith.addi %1, %c2_i32_404 : i32
    %c2_405 = arith.constant 2 : index
    %670 = arith.index_cast %669 : i32 to index
    %c3_406 = arith.constant 3 : index
    %671 = vector.load %arg1[%c2_405, %670, %c3_406] : memref<4x19x19xf32, #tpu.memory_space<vmem>>, vector<1x8x16xf32>
    %672 = vector.shape_cast %671 : vector<1x8x16xf32> to vector<8x16xf32>
    %673 = arith.subf %672, %324 : vector<8x16xf32>
    %c43 = arith.constant 43 : index
    %c0_407 = arith.constant 0 : index
    %c0_408 = arith.constant 0 : index
    %674 = vector.load %arg2[%c43, %c0_407, %c0_408] : memref<64x8x16xf32, #tpu.memory_space<vmem>>, vector<1x8x16xf32>
    %675 = vector.shape_cast %674 : vector<1x8x16xf32> to vector<8x16xf32>
    %676 = vector.shape_cast %673 : vector<8x16xf32> to vector<1x8x16xf32>
    tpu.vector_store %arg2[%c43, %c0_407, %c0_408], %676 {strides = array<i32>} : memref<64x8x16xf32, #tpu.memory_space<vmem>>, vector<1x8x16xf32>,
    %c3_i32_409 = arith.constant 3 : i32
    %677 = arith.addi %1, %c3_i32_409 : i32
    %c2_410 = arith.constant 2 : index
    %678 = arith.index_cast %677 : i32 to index
    %c0_411 = arith.constant 0 : index
    %679 = vector.load %arg1[%c2_410, %678, %c0_411] : memref<4x19x19xf32, #tpu.memory_space<vmem>>, vector<1x8x16xf32>
    %680 = vector.shape_cast %679 : vector<1x8x16xf32> to vector<8x16xf32>
    %681 = arith.subf %680, %324 : vector<8x16xf32>
    %c44 = arith.constant 44 : index
    %c0_412 = arith.constant 0 : index
    %c0_413 = arith.constant 0 : index
    %682 = vector.load %arg2[%c44, %c0_412, %c0_413] : memref<64x8x16xf32, #tpu.memory_space<vmem>>, vector<1x8x16xf32>
    %683 = vector.shape_cast %682 : vector<1x8x16xf32> to vector<8x16xf32>
    %684 = vector.shape_cast %681 : vector<8x16xf32> to vector<1x8x16xf32>
    tpu.vector_store %arg2[%c44, %c0_412, %c0_413], %684 {strides = array<i32>} : memref<64x8x16xf32, #tpu.memory_space<vmem>>, vector<1x8x16xf32>,
    %c3_i32_414 = arith.constant 3 : i32
    %685 = arith.addi %1, %c3_i32_414 : i32
    %c2_415 = arith.constant 2 : index
    %686 = arith.index_cast %685 : i32 to index
    %c1_416 = arith.constant 1 : index
    %687 = vector.load %arg1[%c2_415, %686, %c1_416] : memref<4x19x19xf32, #tpu.memory_space<vmem>>, vector<1x8x16xf32>
    %688 = vector.shape_cast %687 : vector<1x8x16xf32> to vector<8x16xf32>
    %689 = arith.subf %688, %324 : vector<8x16xf32>
    %c45 = arith.constant 45 : index
    %c0_417 = arith.constant 0 : index
    %c0_418 = arith.constant 0 : index
    %690 = vector.load %arg2[%c45, %c0_417, %c0_418] : memref<64x8x16xf32, #tpu.memory_space<vmem>>, vector<1x8x16xf32>
    %691 = vector.shape_cast %690 : vector<1x8x16xf32> to vector<8x16xf32>
    %692 = vector.shape_cast %689 : vector<8x16xf32> to vector<1x8x16xf32>
    tpu.vector_store %arg2[%c45, %c0_417, %c0_418], %692 {strides = array<i32>} : memref<64x8x16xf32, #tpu.memory_space<vmem>>, vector<1x8x16xf32>,
    %c3_i32_419 = arith.constant 3 : i32
    %693 = arith.addi %1, %c3_i32_419 : i32
    %c2_420 = arith.constant 2 : index
    %694 = arith.index_cast %693 : i32 to index
    %c2_421 = arith.constant 2 : index
    %695 = vector.load %arg1[%c2_420, %694, %c2_421] : memref<4x19x19xf32, #tpu.memory_space<vmem>>, vector<1x8x16xf32>
    %696 = vector.shape_cast %695 : vector<1x8x16xf32> to vector<8x16xf32>
    %697 = arith.subf %696, %324 : vector<8x16xf32>
    %c46 = arith.constant 46 : index
    %c0_422 = arith.constant 0 : index
    %c0_423 = arith.constant 0 : index
    %698 = vector.load %arg2[%c46, %c0_422, %c0_423] : memref<64x8x16xf32, #tpu.memory_space<vmem>>, vector<1x8x16xf32>
    %699 = vector.shape_cast %698 : vector<1x8x16xf32> to vector<8x16xf32>
    %700 = vector.shape_cast %697 : vector<8x16xf32> to vector<1x8x16xf32>
    tpu.vector_store %arg2[%c46, %c0_422, %c0_423], %700 {strides = array<i32>} : memref<64x8x16xf32, #tpu.memory_space<vmem>>, vector<1x8x16xf32>,
    %c3_i32_424 = arith.constant 3 : i32
    %701 = arith.addi %1, %c3_i32_424 : i32
    %c2_425 = arith.constant 2 : index
    %702 = arith.index_cast %701 : i32 to index
    %c3_426 = arith.constant 3 : index
    %703 = vector.load %arg1[%c2_425, %702, %c3_426] : memref<4x19x19xf32, #tpu.memory_space<vmem>>, vector<1x8x16xf32>
    %704 = vector.shape_cast %703 : vector<1x8x16xf32> to vector<8x16xf32>
    %705 = arith.subf %704, %324 : vector<8x16xf32>
    %c47 = arith.constant 47 : index
    %c0_427 = arith.constant 0 : index
    %c0_428 = arith.constant 0 : index
    %706 = vector.load %arg2[%c47, %c0_427, %c0_428] : memref<64x8x16xf32, #tpu.memory_space<vmem>>, vector<1x8x16xf32>
    %707 = vector.shape_cast %706 : vector<1x8x16xf32> to vector<8x16xf32>
    %708 = vector.shape_cast %705 : vector<8x16xf32> to vector<1x8x16xf32>
    tpu.vector_store %arg2[%c47, %c0_427, %c0_428], %708 {strides = array<i32>} : memref<64x8x16xf32, #tpu.memory_space<vmem>>, vector<1x8x16xf32>,
    %c0_i32_429 = arith.constant 0 : i32
    %709 = arith.addi %1, %c0_i32_429 : i32
    %c3_430 = arith.constant 3 : index
    %710 = arith.index_cast %709 : i32 to index
    %c0_431 = arith.constant 0 : index
    %711 = vector.load %arg1[%c3_430, %710, %c0_431] : memref<4x19x19xf32, #tpu.memory_space<vmem>>, vector<1x8x16xf32>
    %712 = vector.shape_cast %711 : vector<1x8x16xf32> to vector<8x16xf32>
    %713 = arith.subf %712, %324 : vector<8x16xf32>
    %c48 = arith.constant 48 : index
    %c0_432 = arith.constant 0 : index
    %c0_433 = arith.constant 0 : index
    %714 = vector.load %arg2[%c48, %c0_432, %c0_433] : memref<64x8x16xf32, #tpu.memory_space<vmem>>, vector<1x8x16xf32>
    %715 = vector.shape_cast %714 : vector<1x8x16xf32> to vector<8x16xf32>
    %716 = vector.shape_cast %713 : vector<8x16xf32> to vector<1x8x16xf32>
    tpu.vector_store %arg2[%c48, %c0_432, %c0_433], %716 {strides = array<i32>} : memref<64x8x16xf32, #tpu.memory_space<vmem>>, vector<1x8x16xf32>,
    %c0_i32_434 = arith.constant 0 : i32
    %717 = arith.addi %1, %c0_i32_434 : i32
    %c3_435 = arith.constant 3 : index
    %718 = arith.index_cast %717 : i32 to index
    %c1_436 = arith.constant 1 : index
    %719 = vector.load %arg1[%c3_435, %718, %c1_436] : memref<4x19x19xf32, #tpu.memory_space<vmem>>, vector<1x8x16xf32>
    %720 = vector.shape_cast %719 : vector<1x8x16xf32> to vector<8x16xf32>
    %721 = arith.subf %720, %324 : vector<8x16xf32>
    %c49 = arith.constant 49 : index
    %c0_437 = arith.constant 0 : index
    %c0_438 = arith.constant 0 : index
    %722 = vector.load %arg2[%c49, %c0_437, %c0_438] : memref<64x8x16xf32, #tpu.memory_space<vmem>>, vector<1x8x16xf32>
    %723 = vector.shape_cast %722 : vector<1x8x16xf32> to vector<8x16xf32>
    %724 = vector.shape_cast %721 : vector<8x16xf32> to vector<1x8x16xf32>
    tpu.vector_store %arg2[%c49, %c0_437, %c0_438], %724 {strides = array<i32>} : memref<64x8x16xf32, #tpu.memory_space<vmem>>, vector<1x8x16xf32>,
    %c0_i32_439 = arith.constant 0 : i32
    %725 = arith.addi %1, %c0_i32_439 : i32
    %c3_440 = arith.constant 3 : index
    %726 = arith.index_cast %725 : i32 to index
    %c2_441 = arith.constant 2 : index
    %727 = vector.load %arg1[%c3_440, %726, %c2_441] : memref<4x19x19xf32, #tpu.memory_space<vmem>>, vector<1x8x16xf32>
    %728 = vector.shape_cast %727 : vector<1x8x16xf32> to vector<8x16xf32>
    %729 = arith.subf %728, %324 : vector<8x16xf32>
    %c50 = arith.constant 50 : index
    %c0_442 = arith.constant 0 : index
    %c0_443 = arith.constant 0 : index
    %730 = vector.load %arg2[%c50, %c0_442, %c0_443] : memref<64x8x16xf32, #tpu.memory_space<vmem>>, vector<1x8x16xf32>
    %731 = vector.shape_cast %730 : vector<1x8x16xf32> to vector<8x16xf32>
    %732 = vector.shape_cast %729 : vector<8x16xf32> to vector<1x8x16xf32>
    tpu.vector_store %arg2[%c50, %c0_442, %c0_443], %732 {strides = array<i32>} : memref<64x8x16xf32, #tpu.memory_space<vmem>>, vector<1x8x16xf32>,
    %c0_i32_444 = arith.constant 0 : i32
    %733 = arith.addi %1, %c0_i32_444 : i32
    %c3_445 = arith.constant 3 : index
    %734 = arith.index_cast %733 : i32 to index
    %c3_446 = arith.constant 3 : index
    %735 = vector.load %arg1[%c3_445, %734, %c3_446] : memref<4x19x19xf32, #tpu.memory_space<vmem>>, vector<1x8x16xf32>
    %736 = vector.shape_cast %735 : vector<1x8x16xf32> to vector<8x16xf32>
    %737 = arith.subf %736, %324 : vector<8x16xf32>
    %c51 = arith.constant 51 : index
    %c0_447 = arith.constant 0 : index
    %c0_448 = arith.constant 0 : index
    %738 = vector.load %arg2[%c51, %c0_447, %c0_448] : memref<64x8x16xf32, #tpu.memory_space<vmem>>, vector<1x8x16xf32>
    %739 = vector.shape_cast %738 : vector<1x8x16xf32> to vector<8x16xf32>
    %740 = vector.shape_cast %737 : vector<8x16xf32> to vector<1x8x16xf32>
    tpu.vector_store %arg2[%c51, %c0_447, %c0_448], %740 {strides = array<i32>} : memref<64x8x16xf32, #tpu.memory_space<vmem>>, vector<1x8x16xf32>,
    %c1_i32_449 = arith.constant 1 : i32
    %741 = arith.addi %1, %c1_i32_449 : i32
    %c3_450 = arith.constant 3 : index
    %742 = arith.index_cast %741 : i32 to index
    %c0_451 = arith.constant 0 : index
    %743 = vector.load %arg1[%c3_450, %742, %c0_451] : memref<4x19x19xf32, #tpu.memory_space<vmem>>, vector<1x8x16xf32>
    %744 = vector.shape_cast %743 : vector<1x8x16xf32> to vector<8x16xf32>
    %745 = arith.subf %744, %324 : vector<8x16xf32>
    %c52 = arith.constant 52 : index
    %c0_452 = arith.constant 0 : index
    %c0_453 = arith.constant 0 : index
    %746 = vector.load %arg2[%c52, %c0_452, %c0_453] : memref<64x8x16xf32, #tpu.memory_space<vmem>>, vector<1x8x16xf32>
    %747 = vector.shape_cast %746 : vector<1x8x16xf32> to vector<8x16xf32>
    %748 = vector.shape_cast %745 : vector<8x16xf32> to vector<1x8x16xf32>
    tpu.vector_store %arg2[%c52, %c0_452, %c0_453], %748 {strides = array<i32>} : memref<64x8x16xf32, #tpu.memory_space<vmem>>, vector<1x8x16xf32>,
    %c1_i32_454 = arith.constant 1 : i32
    %749 = arith.addi %1, %c1_i32_454 : i32
    %c3_455 = arith.constant 3 : index
    %750 = arith.index_cast %749 : i32 to index
    %c1_456 = arith.constant 1 : index
    %751 = vector.load %arg1[%c3_455, %750, %c1_456] : memref<4x19x19xf32, #tpu.memory_space<vmem>>, vector<1x8x16xf32>
    %752 = vector.shape_cast %751 : vector<1x8x16xf32> to vector<8x16xf32>
    %753 = arith.subf %752, %324 : vector<8x16xf32>
    %c53 = arith.constant 53 : index
    %c0_457 = arith.constant 0 : index
    %c0_458 = arith.constant 0 : index
    %754 = vector.load %arg2[%c53, %c0_457, %c0_458] : memref<64x8x16xf32, #tpu.memory_space<vmem>>, vector<1x8x16xf32>
    %755 = vector.shape_cast %754 : vector<1x8x16xf32> to vector<8x16xf32>
    %756 = vector.shape_cast %753 : vector<8x16xf32> to vector<1x8x16xf32>
    tpu.vector_store %arg2[%c53, %c0_457, %c0_458], %756 {strides = array<i32>} : memref<64x8x16xf32, #tpu.memory_space<vmem>>, vector<1x8x16xf32>,
    %c1_i32_459 = arith.constant 1 : i32
    %757 = arith.addi %1, %c1_i32_459 : i32
    %c3_460 = arith.constant 3 : index
    %758 = arith.index_cast %757 : i32 to index
    %c2_461 = arith.constant 2 : index
    %759 = vector.load %arg1[%c3_460, %758, %c2_461] : memref<4x19x19xf32, #tpu.memory_space<vmem>>, vector<1x8x16xf32>
    %760 = vector.shape_cast %759 : vector<1x8x16xf32> to vector<8x16xf32>
    %761 = arith.subf %760, %324 : vector<8x16xf32>
    %c54 = arith.constant 54 : index
    %c0_462 = arith.constant 0 : index
    %c0_463 = arith.constant 0 : index
    %762 = vector.load %arg2[%c54, %c0_462, %c0_463] : memref<64x8x16xf32, #tpu.memory_space<vmem>>, vector<1x8x16xf32>
    %763 = vector.shape_cast %762 : vector<1x8x16xf32> to vector<8x16xf32>
    %764 = vector.shape_cast %761 : vector<8x16xf32> to vector<1x8x16xf32>
    tpu.vector_store %arg2[%c54, %c0_462, %c0_463], %764 {strides = array<i32>} : memref<64x8x16xf32, #tpu.memory_space<vmem>>, vector<1x8x16xf32>,
    %c1_i32_464 = arith.constant 1 : i32
    %765 = arith.addi %1, %c1_i32_464 : i32
    %c3_465 = arith.constant 3 : index
    %766 = arith.index_cast %765 : i32 to index
    %c3_466 = arith.constant 3 : index
    %767 = vector.load %arg1[%c3_465, %766, %c3_466] : memref<4x19x19xf32, #tpu.memory_space<vmem>>, vector<1x8x16xf32>
    %768 = vector.shape_cast %767 : vector<1x8x16xf32> to vector<8x16xf32>
    %769 = arith.subf %768, %324 : vector<8x16xf32>
    %c55 = arith.constant 55 : index
    %c0_467 = arith.constant 0 : index
    %c0_468 = arith.constant 0 : index
    %770 = vector.load %arg2[%c55, %c0_467, %c0_468] : memref<64x8x16xf32, #tpu.memory_space<vmem>>, vector<1x8x16xf32>
    %771 = vector.shape_cast %770 : vector<1x8x16xf32> to vector<8x16xf32>
    %772 = vector.shape_cast %769 : vector<8x16xf32> to vector<1x8x16xf32>
    tpu.vector_store %arg2[%c55, %c0_467, %c0_468], %772 {strides = array<i32>} : memref<64x8x16xf32, #tpu.memory_space<vmem>>, vector<1x8x16xf32>,
    %c2_i32_469 = arith.constant 2 : i32
    %773 = arith.addi %1, %c2_i32_469 : i32
    %c3_470 = arith.constant 3 : index
    %774 = arith.index_cast %773 : i32 to index
    %c0_471 = arith.constant 0 : index
    %775 = vector.load %arg1[%c3_470, %774, %c0_471] : memref<4x19x19xf32, #tpu.memory_space<vmem>>, vector<1x8x16xf32>
    %776 = vector.shape_cast %775 : vector<1x8x16xf32> to vector<8x16xf32>
    %777 = arith.subf %776, %324 : vector<8x16xf32>
    %c56 = arith.constant 56 : index
    %c0_472 = arith.constant 0 : index
    %c0_473 = arith.constant 0 : index
    %778 = vector.load %arg2[%c56, %c0_472, %c0_473] : memref<64x8x16xf32, #tpu.memory_space<vmem>>, vector<1x8x16xf32>
    %779 = vector.shape_cast %778 : vector<1x8x16xf32> to vector<8x16xf32>
    %780 = vector.shape_cast %777 : vector<8x16xf32> to vector<1x8x16xf32>
    tpu.vector_store %arg2[%c56, %c0_472, %c0_473], %780 {strides = array<i32>} : memref<64x8x16xf32, #tpu.memory_space<vmem>>, vector<1x8x16xf32>,
    %c2_i32_474 = arith.constant 2 : i32
    %781 = arith.addi %1, %c2_i32_474 : i32
    %c3_475 = arith.constant 3 : index
    %782 = arith.index_cast %781 : i32 to index
    %c1_476 = arith.constant 1 : index
    %783 = vector.load %arg1[%c3_475, %782, %c1_476] : memref<4x19x19xf32, #tpu.memory_space<vmem>>, vector<1x8x16xf32>
    %784 = vector.shape_cast %783 : vector<1x8x16xf32> to vector<8x16xf32>
    %785 = arith.subf %784, %324 : vector<8x16xf32>
    %c57 = arith.constant 57 : index
    %c0_477 = arith.constant 0 : index
    %c0_478 = arith.constant 0 : index
    %786 = vector.load %arg2[%c57, %c0_477, %c0_478] : memref<64x8x16xf32, #tpu.memory_space<vmem>>, vector<1x8x16xf32>
    %787 = vector.shape_cast %786 : vector<1x8x16xf32> to vector<8x16xf32>
    %788 = vector.shape_cast %785 : vector<8x16xf32> to vector<1x8x16xf32>
    tpu.vector_store %arg2[%c57, %c0_477, %c0_478], %788 {strides = array<i32>} : memref<64x8x16xf32, #tpu.memory_space<vmem>>, vector<1x8x16xf32>,
    %c2_i32_479 = arith.constant 2 : i32
    %789 = arith.addi %1, %c2_i32_479 : i32
    %c3_480 = arith.constant 3 : index
    %790 = arith.index_cast %789 : i32 to index
    %c2_481 = arith.constant 2 : index
    %791 = vector.load %arg1[%c3_480, %790, %c2_481] : memref<4x19x19xf32, #tpu.memory_space<vmem>>, vector<1x8x16xf32>
    %792 = vector.shape_cast %791 : vector<1x8x16xf32> to vector<8x16xf32>
    %793 = arith.subf %792, %324 : vector<8x16xf32>
    %c58 = arith.constant 58 : index
    %c0_482 = arith.constant 0 : index
    %c0_483 = arith.constant 0 : index
    %794 = vector.load %arg2[%c58, %c0_482, %c0_483] : memref<64x8x16xf32, #tpu.memory_space<vmem>>, vector<1x8x16xf32>
    %795 = vector.shape_cast %794 : vector<1x8x16xf32> to vector<8x16xf32>
    %796 = vector.shape_cast %793 : vector<8x16xf32> to vector<1x8x16xf32>
    tpu.vector_store %arg2[%c58, %c0_482, %c0_483], %796 {strides = array<i32>} : memref<64x8x16xf32, #tpu.memory_space<vmem>>, vector<1x8x16xf32>,
    %c2_i32_484 = arith.constant 2 : i32
    %797 = arith.addi %1, %c2_i32_484 : i32
    %c3_485 = arith.constant 3 : index
    %798 = arith.index_cast %797 : i32 to index
    %c3_486 = arith.constant 3 : index
    %799 = vector.load %arg1[%c3_485, %798, %c3_486] : memref<4x19x19xf32, #tpu.memory_space<vmem>>, vector<1x8x16xf32>
    %800 = vector.shape_cast %799 : vector<1x8x16xf32> to vector<8x16xf32>
    %801 = arith.subf %800, %324 : vector<8x16xf32>
    %c59 = arith.constant 59 : index
    %c0_487 = arith.constant 0 : index
    %c0_488 = arith.constant 0 : index
    %802 = vector.load %arg2[%c59, %c0_487, %c0_488] : memref<64x8x16xf32, #tpu.memory_space<vmem>>, vector<1x8x16xf32>
    %803 = vector.shape_cast %802 : vector<1x8x16xf32> to vector<8x16xf32>
    %804 = vector.shape_cast %801 : vector<8x16xf32> to vector<1x8x16xf32>
    tpu.vector_store %arg2[%c59, %c0_487, %c0_488], %804 {strides = array<i32>} : memref<64x8x16xf32, #tpu.memory_space<vmem>>, vector<1x8x16xf32>,
    %c3_i32_489 = arith.constant 3 : i32
    %805 = arith.addi %1, %c3_i32_489 : i32
    %c3_490 = arith.constant 3 : index
    %806 = arith.index_cast %805 : i32 to index
    %c0_491 = arith.constant 0 : index
    %807 = vector.load %arg1[%c3_490, %806, %c0_491] : memref<4x19x19xf32, #tpu.memory_space<vmem>>, vector<1x8x16xf32>
    %808 = vector.shape_cast %807 : vector<1x8x16xf32> to vector<8x16xf32>
    %809 = arith.subf %808, %324 : vector<8x16xf32>
    %c60 = arith.constant 60 : index
    %c0_492 = arith.constant 0 : index
    %c0_493 = arith.constant 0 : index
    %810 = vector.load %arg2[%c60, %c0_492, %c0_493] : memref<64x8x16xf32, #tpu.memory_space<vmem>>, vector<1x8x16xf32>
    %811 = vector.shape_cast %810 : vector<1x8x16xf32> to vector<8x16xf32>
    %812 = vector.shape_cast %809 : vector<8x16xf32> to vector<1x8x16xf32>
    tpu.vector_store %arg2[%c60, %c0_492, %c0_493], %812 {strides = array<i32>} : memref<64x8x16xf32, #tpu.memory_space<vmem>>, vector<1x8x16xf32>,
    %c3_i32_494 = arith.constant 3 : i32
    %813 = arith.addi %1, %c3_i32_494 : i32
    %c3_495 = arith.constant 3 : index
    %814 = arith.index_cast %813 : i32 to index
    %c1_496 = arith.constant 1 : index
    %815 = vector.load %arg1[%c3_495, %814, %c1_496] : memref<4x19x19xf32, #tpu.memory_space<vmem>>, vector<1x8x16xf32>
    %816 = vector.shape_cast %815 : vector<1x8x16xf32> to vector<8x16xf32>
    %817 = arith.subf %816, %324 : vector<8x16xf32>
    %c61 = arith.constant 61 : index
    %c0_497 = arith.constant 0 : index
    %c0_498 = arith.constant 0 : index
    %818 = vector.load %arg2[%c61, %c0_497, %c0_498] : memref<64x8x16xf32, #tpu.memory_space<vmem>>, vector<1x8x16xf32>
    %819 = vector.shape_cast %818 : vector<1x8x16xf32> to vector<8x16xf32>
    %820 = vector.shape_cast %817 : vector<8x16xf32> to vector<1x8x16xf32>
    tpu.vector_store %arg2[%c61, %c0_497, %c0_498], %820 {strides = array<i32>} : memref<64x8x16xf32, #tpu.memory_space<vmem>>, vector<1x8x16xf32>,
    %c3_i32_499 = arith.constant 3 : i32
    %821 = arith.addi %1, %c3_i32_499 : i32
    %c3_500 = arith.constant 3 : index
    %822 = arith.index_cast %821 : i32 to index
    %c2_501 = arith.constant 2 : index
    %823 = vector.load %arg1[%c3_500, %822, %c2_501] : memref<4x19x19xf32, #tpu.memory_space<vmem>>, vector<1x8x16xf32>
    %824 = vector.shape_cast %823 : vector<1x8x16xf32> to vector<8x16xf32>
    %825 = arith.subf %824, %324 : vector<8x16xf32>
    %c62 = arith.constant 62 : index
    %c0_502 = arith.constant 0 : index
    %c0_503 = arith.constant 0 : index
    %826 = vector.load %arg2[%c62, %c0_502, %c0_503] : memref<64x8x16xf32, #tpu.memory_space<vmem>>, vector<1x8x16xf32>
    %827 = vector.shape_cast %826 : vector<1x8x16xf32> to vector<8x16xf32>
    %828 = vector.shape_cast %825 : vector<8x16xf32> to vector<1x8x16xf32>
    tpu.vector_store %arg2[%c62, %c0_502, %c0_503], %828 {strides = array<i32>} : memref<64x8x16xf32, #tpu.memory_space<vmem>>, vector<1x8x16xf32>,
    %c3_i32_504 = arith.constant 3 : i32
    %829 = arith.addi %1, %c3_i32_504 : i32
    %c3_505 = arith.constant 3 : index
    %830 = arith.index_cast %829 : i32 to index
    %c3_506 = arith.constant 3 : index
    %831 = vector.load %arg1[%c3_505, %830, %c3_506] : memref<4x19x19xf32, #tpu.memory_space<vmem>>, vector<1x8x16xf32>
    %832 = vector.shape_cast %831 : vector<1x8x16xf32> to vector<8x16xf32>
    %833 = arith.subf %832, %324 : vector<8x16xf32>
    %c63 = arith.constant 63 : index
    %c0_507 = arith.constant 0 : index
    %c0_508 = arith.constant 0 : index
    %834 = vector.load %arg2[%c63, %c0_507, %c0_508] : memref<64x8x16xf32, #tpu.memory_space<vmem>>, vector<1x8x16xf32>
    %835 = vector.shape_cast %834 : vector<1x8x16xf32> to vector<8x16xf32>
    %836 = vector.shape_cast %833 : vector<8x16xf32> to vector<1x8x16xf32>
    tpu.vector_store %arg2[%c63, %c0_507, %c0_508], %836 {strides = array<i32>} : memref<64x8x16xf32, #tpu.memory_space<vmem>>, vector<1x8x16xf32>,
    return
  }
  func.func @transform_0(%arg0: i32) -> (i32, i32, i32) {
    %c0_i32 = arith.constant 0 : i32
    %c0_i32_0 = arith.constant 0 : i32
    %c0_i32_1 = arith.constant 0 : i32
    %c0_i32_2 = arith.constant 0 : i32
    return %c0_i32, %c0_i32_0, %c0_i32_1 : i32, i32, i32
  }
  func.func @transform_1(%arg0: i32) -> (i32, i32, i32) {
    %c0_i32 = arith.constant 0 : i32
    %c0_i32_0 = arith.constant 0 : i32
    %c0_i32_1 = arith.constant 0 : i32
    return %c0_i32, %arg0, %c0_i32_0 : i32, i32, i32
  }
}

</mosaic_0001>

<bundles_post_ra>
// kernel: tpu_custom_call.1
= control target key start
LH: loop header
LB: loop body
LE: loop exit
PB: predicated region body
PF: predicated region fallthrough
CT: control target
= control target key end

     0   :  { %s1433_s6 = smov 0   ;;  %s1435_s7 = smov 0   ;;  %s2070_s0 = inlined_call_operand.vmem [shape: f32[4,19,19], index: 0, kind: input, shape index: {}]   ;;  %s2071_s1 = inlined_call_operand.vmem [shape: f32[64,16,16], index: 1, kind: output, shape index: {}]  }
   0x1   :  { %s1437_s8 = smov 0  }
   0x2 LB: > { %s1200_s9 = sadd.s32 4294967295, %s1415_s8   ;;  %s1446_s10 = sadd.s32 1, %s1415_s8   ;;  %s1415_s8 = sphi %s1437_s8, %s2075_s8   ;;  %s1411_s7 = sphi %s1435_s7, %s2074_s7   ;;  %s1407_s6 = sphi %s1433_s6, %s2073_s6  }
   0x3   : > { %s36_s11 = ssub.s32 %s1415_s8, %s1446_s10  ;;  %s39_s12 = sadd.s32 1, %s1411_s7 }
   0x4   : > { %p37_p0 = scmp.eq.s32.totalorder %s36_s11, 0  ;;  %p49_p1 = scmp.ne.s32.totalorder %s1411_s7, %s1407_s6 }
   0x5   : > { %p50_p2 = scmp.eq.s32.totalorder %s1200_s9, 1  ;;  %p1203_p3 = scmp.ge.s32.totalorder %s1415_s8, 1 }
   0x6   : > { %s1453_s13 = scalar_select %p37_p0, %s1411_s7, %s39_s12  }
   0x7   : > { %p1455_p4 = por %p50_p2, %p49_p1  ;;  %p77_p5 = scmp.lt.s32.totalorder %s1415_s8, 3 }
   0x9   : > { %p78_p6 = pnand %p1203_p3, %p77_p5 }
   0xa   : > { %s1459_s15 = sshll.u32 (!%p78_p6), %s1200_s9, 3  ;;  %s1417_s19 = smov (!%p78_p6), 127  }
   0xb   : > { %81 = sbr.rel (%p78_p6) target bundleno = 628 (0x274), region = 24  ;;  %s1465_s18 = scalar_lea.vmem (!%p78_p6), %s2070_s0, %s1459_s15 }
   0xc   : > { %s1418_s20 = smov (!%p78_p6), 125   ;;  %s1419_s21 = smov (!%p78_p6), 126  }
   0xd   : > { %s88_s22 = sand.u32 (!%p78_p6), 1, %s1407_s6   ;;  %s1420_s24 = smov (!%p78_p6), 3  }
   0xe   : > { %s1204_s23 = sshll.u32 (!%p78_p6), %s88_s22, 9  ;;  %s1421_s25 = smov (!%p78_p6), 2  }
   0xf   : > { %s1632_s26 = scalar_lea.vmem (!%p78_p6), [#allocation2], %s1204_s23  ;;  %s1422_s27 = smov (!%p78_p6), 1  }
  0x10   : > { %v1468_v0 = vld [vmem:[%s1465_s18] sm:$0xff]  ;;  %v1504_v4 = vld [vmem:[%s1465_s18 + $0x18] sm:$0xff]  ;;  %v1540_v8 = vld [vmem:[%s1465_s18 + $0x30] sm:$0xff]  ;;  %vm365_vm0 = vcmask 130048   ;;  %s1930_s30 = scalar_lea.vmem (%p1455_p4), %s2071_s1, %s1459_s15 }
  0x11   : > { %96 = vrot.lane.b32.xlu0 %v1468_v0, %s1417_s19  ;;  %104 = vrot.lane.b32.xlu1 %v1468_v0, %s1418_s20  ;;  %v1475_v1 = vld [vmem:[%s1465_s18 + $0x1] sm:$0xff]  ;;  %v1513_v5 = vld [vmem:[%s1465_s18 + $0x19] sm:$0xff] }
  0x12   : > { %117 = vrot.lane.b32.xlu2 %v1475_v1, %s1419_s21  ;;  %v1486_v2 = vld [vmem:[%s1465_s18 + $0x2] sm:$0xff]  ;;  %v1522_v6 = vld [vmem:[%s1465_s18 + $0x1a] sm:$0xff]  ;;  %v1549_v9 = vld [vmem:[%s1465_s18 + $0x31] sm:$0xff] }
  0x13   : > { %v1495_v3 = vld [vmem:[%s1465_s18 + $0x3] sm:$0xff]  ;;  %v1531_v7 = vld [vmem:[%s1465_s18 + $0x1b] sm:$0xff]  ;;  %v1558_v10 = vld [vmem:[%s1465_s18 + $0x32] sm:$0xff] }
  0x14   : > { %v1567_v11 = vld [vmem:[%s1465_s18 + $0x33] sm:$0xff]  ;;  %v1576_v13 = vld [vmem:[%s1465_s18 + $0x48] sm:$0xff] }
  0x15   : > { %v1585_v14 = vld [vmem:[%s1465_s18 + $0x49] sm:$0xff] }
  0x16   : > { %v1594_v16 = vld [vmem:[%s1465_s18 + $0x4a] sm:$0xff] }
  0x17   : > { %v1603_v20 = vld [vmem:[%s1465_s18 + $0x4b] sm:$0xff] }
  0x19   : > { %100 = vrot.lane.b32.xlu0 %v1468_v0, %s1419_s21  ;;  %113 = vrot.lane.b32.xlu1 %v1475_v1, %s1417_s19 }
  0x1a   : > { %121 = vrot.lane.b32.xlu2 %v1475_v1, %s1418_s20 }
  0x21   : > { %130 = vrot.lane.b32.xlu0 %v1486_v2, %s1417_s19  ;;  %134 = vrot.lane.b32.xlu1 %v1486_v2, %s1419_s21 }
  0x22   : > { %138 = vrot.lane.b32.xlu2 %v1486_v2, %s1418_s20 }
  0x29   : > { %147 = vrot.lane.b32.xlu0 %v1495_v3, %s1417_s19  ;;  %151 = vrot.lane.b32.xlu1 %v1495_v3, %s1419_s21 }
  0x2a   : > { %155 = vrot.lane.b32.xlu2 %v1495_v3, %s1418_s20 }
  0x31   : > { %164 = vrot.lane.b32.xlu0 %v1504_v4, %s1417_s19  ;;  %168 = vrot.lane.b32.xlu1 %v1504_v4, %s1419_s21 }
  0x32   : > { %172 = vrot.lane.b32.xlu2 %v1504_v4, %s1418_s20 }
  0x39   : > { %181 = vrot.lane.b32.xlu0 %v1513_v5, %s1417_s19  ;;  %185 = vrot.lane.b32.xlu1 %v1513_v5, %s1419_s21 }
  0x3a   : > { %189 = vrot.lane.b32.xlu2 %v1513_v5, %s1418_s20 }
  0x41   : > { %198 = vrot.lane.b32.xlu0 %v1522_v6, %s1417_s19  ;;  %202 = vrot.lane.b32.xlu1 %v1522_v6, %s1419_s21 }
  0x42   : > { %206 = vrot.lane.b32.xlu2 %v1522_v6, %s1418_s20 }
  0x49   : > { %215 = vrot.lane.b32.xlu0 %v1531_v7, %s1417_s19  ;;  %219 = vrot.lane.b32.xlu1 %v1531_v7, %s1419_s21 }
  0x4a   : > { %223 = vrot.lane.b32.xlu2 %v1531_v7, %s1418_s20 }
  0x51   : > { %232 = vrot.lane.b32.xlu0 %v1540_v8, %s1417_s19  ;;  %236 = vrot.lane.b32.xlu1 %v1540_v8, %s1419_s21 }
  0x52   : > { %240 = vrot.lane.b32.xlu2 %v1540_v8, %s1418_s20 }
  0x59   : > { %249 = vrot.lane.b32.xlu0 %v1549_v9, %s1417_s19  ;;  %253 = vrot.lane.b32.xlu1 %v1549_v9, %s1419_s21 }
  0x5a   : > { %257 = vrot.lane.b32.xlu2 %v1549_v9, %s1418_s20 }
  0x61   : > { %266 = vrot.lane.b32.xlu0 %v1558_v10, %s1417_s19  ;;  %270 = vrot.lane.b32.xlu1 %v1558_v10, %s1419_s21 }
  0x62   : > { %274 = vrot.lane.b32.xlu2 %v1558_v10, %s1418_s20 }
  0x69   : > { %283 = vrot.lane.b32.xlu0 %v1567_v11, %s1417_s19  ;;  %287 = vrot.lane.b32.xlu1 %v1567_v11, %s1419_s21 }
  0x6a   : > { %291 = vrot.lane.b32.xlu2 %v1567_v11, %s1418_s20 }
  0x6c   : > { %v118_v12 = vpop.permute.xlu2 %117 }
  0x71   : > { %300 = vrot.lane.b32.xlu0 %v1576_v13, %s1417_s19  ;;  %304 = vrot.lane.b32.xlu1 %v1576_v13, %s1419_s21 }
  0x72   : > { %308 = vrot.lane.b32.xlu2 %v1576_v13, %s1418_s20 }
  0x74   : > { %v122_v15 = vpop.permute.xlu2 %121 }
  0x79   : > { %317 = vrot.lane.b32.xlu0 %v1585_v14, %s1417_s19  ;;  %321 = vrot.lane.b32.xlu1 %v1585_v14, %s1419_s21 }
  0x7a   : > { %325 = vrot.lane.b32.xlu2 %v1585_v14, %s1418_s20 }
  0x7c   : > { %v139_v17 = vpop.permute.xlu2 %138 }
  0x81   : > { %334 = vrot.lane.b32.xlu0 %v1594_v16, %s1417_s19  ;;  %338 = vrot.lane.b32.xlu1 %v1594_v16, %s1419_s21 }
  0x82   : > { %342 = vrot.lane.b32.xlu2 %v1594_v16, %s1418_s20 }
  0x83   : > { %v97_v18 = vpop.permute.xlu0 %96  ;;  %v105_v19 = vpop.permute.xlu1 %104 }
  0x84   : > { %v99_v21 = vadd.f32 %v97_v18, %v1468_v0  ;;  %v156_v22 = vpop.permute.xlu2 %155 }
  0x89   : > { %351 = vrot.lane.b32.xlu0 %v1603_v20, %s1417_s19  ;;  %355 = vrot.lane.b32.xlu1 %v1603_v20, %s1419_s21 }
  0x8a   : > { %359 = vrot.lane.b32.xlu2 %v1603_v20, %s1418_s20 }
  0x8b   : > { %v101_v23 = vpop.permute.xlu0 %100  ;;  %v114_v24 = vpop.permute.xlu1 %113 }
  0x8c   : > { %v103_v25 = vadd.f32 %v101_v23, %v99_v21  ;;  %v173_v32 = vpop.permute.xlu2 %172 }
  0x8e   : > { %v107_v26 = vadd.f32 %v105_v19, %v103_v25 }
  0x90   : > { %v111_v27 = vadd.f32 %v1475_v1, %v107_v26 }
  0x92   : > { %v116_v28 = vadd.f32 %v114_v24, %v111_v27 }
  0x93   : > { %v131_v29 = vpop.permute.xlu0 %130  ;;  %v135_v30 = vpop.permute.xlu1 %134 }
  0x94   : > { %v120_v31 = vadd.f32 %v118_v12, %v116_v28  ;;  %v190_v40 = vpop.permute.xlu2 %189 }
  0x96   : > { %v124_v33 = vadd.f32 %v122_v15, %v120_v31 }
  0x98   : > { %v128_v34 = vadd.f32 %v1486_v2, %v124_v33 }
  0x9a   : > { %v133_v35 = vadd.f32 %v131_v29, %v128_v34 }
  0x9b   : > { %v148_v36 = vpop.permute.xlu0 %147  ;;  %v152_v37 = vpop.permute.xlu1 %151 }
  0x9c   : > { %v137_v38 = vadd.f32 %v135_v30, %v133_v35  ;;  %v207_v48 = vpop.permute.xlu2 %206 }
  0x9e   : > { %v141_v39 = vadd.f32 %v139_v17, %v137_v38 }
  0xa0   : > { %v145_v41 = vadd.f32 %v1495_v3, %v141_v39 }
  0xa2   : > { %v150_v42 = vadd.f32 %v148_v36, %v145_v41 }
  0xa3   : > { %v165_v43 = vpop.permute.xlu0 %164  ;;  %v169_v44 = vpop.permute.xlu1 %168 }
  0xa4   : > { %v154_v45 = vadd.f32 %v152_v37, %v150_v42  ;;  %v224_v56 = vpop.permute.xlu2 %223 }
  0xa6   : > { %v158_v46 = vadd.f32 %v156_v22, %v154_v45 }
  0xa8   : > { %v162_v47 = vadd.f32 %v1504_v4, %v158_v46 }
  0xaa   : > { %v167_v49 = vadd.f32 %v165_v43, %v162_v47 }
  0xab   : > { %v182_v50 = vpop.permute.xlu0 %181  ;;  %v186_v51 = vpop.permute.xlu1 %185 }
  0xac   : > { %v171_v52 = vadd.f32 %v169_v44, %v167_v49  ;;  %v241_v17 = vpop.permute.xlu2 %240 }
  0xae   : > { %v175_v53 = vadd.f32 %v173_v32, %v171_v52 }
  0xb0   : > { %v179_v54 = vadd.f32 %v1513_v5, %v175_v53 }
  0xb2   : > { %v184_v55 = vadd.f32 %v182_v50, %v179_v54 }
  0xb3   : > { %v199_v57 = vpop.permute.xlu0 %198  ;;  %v203_v58 = vpop.permute.xlu1 %202 }
  0xb4   : > { %v188_v59 = vadd.f32 %v186_v51, %v184_v55  ;;  %v258_v26 = vpop.permute.xlu2 %257 }
  0xb6   : > { %v192_v60 = vadd.f32 %v190_v40, %v188_v59 }
  0xb8   : > { %v196_v61 = vadd.f32 %v1522_v6, %v192_v60 }
  0xba   : > { %v201_v62 = vadd.f32 %v199_v57, %v196_v61 }
  0xbb   : > { %v216_v63 = vpop.permute.xlu0 %215  ;;  %v220_v12 = vpop.permute.xlu1 %219 }
  0xbc   : > { %v205_v15 = vadd.f32 %v203_v58, %v201_v62  ;;  %v275_v34 = vpop.permute.xlu2 %274 }
  0xbe   : > { %v209_v18 = vadd.f32 %v207_v48, %v205_v15 }
  0xc0   : > { %v213_v19 = vadd.f32 %v1531_v7, %v209_v18 }
  0xc2   : > { %v218_v21 = vadd.f32 %v216_v63, %v213_v19 }
  0xc3   : > { %v233_v22 = vpop.permute.xlu0 %232  ;;  %v237_v23 = vpop.permute.xlu1 %236 }
  0xc4   : > { %v222_v24 = vadd.f32 %v220_v12, %v218_v21  ;;  %v292_v42 = vpop.permute.xlu2 %291 }
  0xc6   : > { %v226_v25 = vadd.f32 %v224_v56, %v222_v24 }
  0xc8   : > { %v230_v27 = vadd.f32 %v1540_v8, %v226_v25 }
  0xca   : > { %v235_v28 = vadd.f32 %v233_v22, %v230_v27 }
  0xcb   : > { %v250_v29 = vpop.permute.xlu0 %249  ;;  %v254_v30 = vpop.permute.xlu1 %253 }
  0xcc   : > { %v239_v31 = vadd.f32 %v237_v23, %v235_v28  ;;  %v309_v52 = vpop.permute.xlu2 %308 }
  0xce   : > { %v243_v32 = vadd.f32 %v241_v17, %v239_v31 }
  0xd0   : > { %v247_v33 = vadd.f32 %v1549_v9, %v243_v32 }
  0xd2   : > { %v252_v35 = vadd.f32 %v250_v29, %v247_v33 }
  0xd3   : > { %v267_v36 = vpop.permute.xlu0 %266  ;;  %v271_v37 = vpop.permute.xlu1 %270 }
  0xd4   : > { %v256_v38 = vadd.f32 %v254_v30, %v252_v35  ;;  %v326_v60 = vpop.permute.xlu2 %325 }
  0xd6   : > { %v260_v39 = vadd.f32 %v258_v26, %v256_v38 }
  0xd8   : > { %v264_v40 = vadd.f32 %v1558_v10, %v260_v39 }
  0xda   : > { %v269_v41 = vadd.f32 %v267_v36, %v264_v40 }
  0xdb   : > { %v284_v43 = vpop.permute.xlu0 %283  ;;  %v288_v44 = vpop.permute.xlu1 %287 }
  0xdc   : > { %v273_v45 = vadd.f32 %v271_v37, %v269_v41  ;;  %v343_v19 = vpop.permute.xlu2 %342 }
  0xde   : > { %v277_v46 = vadd.f32 %v275_v34, %v273_v45 }
  0xe0   : > { %v281_v47 = vadd.f32 %v1567_v11, %v277_v46 }
  0xe2   : > { %v286_v48 = vadd.f32 %v284_v43, %v281_v47 }
  0xe3   : > { %v301_v49 = vpop.permute.xlu0 %300  ;;  %v305_v50 = vpop.permute.xlu1 %304 }
  0xe4   : > { %v290_v51 = vadd.f32 %v288_v44, %v286_v48  ;;  %v360_v28 = vpop.permute.xlu2 %359 }
  0xe6   : > { %v294_v53 = vadd.f32 %v292_v42, %v290_v51 }
  0xe8   : > { %v298_v54 = vadd.f32 %v1576_v13, %v294_v53 }
  0xea   : > { %v303_v55 = vadd.f32 %v301_v49, %v298_v54 }
  0xeb   : > { %v318_v56 = vpop.permute.xlu0 %317  ;;  %v322_v58 = vpop.permute.xlu1 %321 }
  0xec   : > { %v307_v57 = vadd.f32 %v305_v50, %v303_v55 }
  0xee   : > { %v311_v59 = vadd.f32 %v309_v52, %v307_v57 }
  0xf0   : > { %v315_v61 = vadd.f32 %v1585_v14, %v311_v59 }
  0xf2   : > { %v320_v62 = vadd.f32 %v318_v56, %v315_v61 }
  0xf3   : > { %v335_v12 = vpop.permute.xlu0 %334  ;;  %v339_v17 = vpop.permute.xlu1 %338 }
  0xf4   : > { %v324_v63 = vadd.f32 %v322_v58, %v320_v62 }
  0xf6   : > { %v328_v15 = vadd.f32 %v326_v60, %v324_v63 }
  0xf8   : > { %v332_v18 = vadd.f32 %v1594_v16, %v328_v15 }
  0xfa   : > { %v337_v21 = vadd.f32 %v335_v12, %v332_v18 }
  0xfb   : > { %v352_v24 = vpop.permute.xlu0 %351  ;;  %v356_v26 = vpop.permute.xlu1 %355 }
  0xfc   : > { %v341_v22 = vadd.f32 %v339_v17, %v337_v21 }
  0xfe   : > { %v345_v23 = vadd.f32 %v343_v19, %v341_v22 }
 0x100   : > { %v349_v25 = vadd.f32 %v1603_v20, %v345_v23 }
 0x102   : > { %v354_v27 = vadd.f32 %v352_v24, %v349_v25 }
 0x104   : > { %v358_v29 = vadd.f32 %v356_v26, %v354_v27 }
 0x106   : > { %v362_v30 = vadd.f32 %v360_v28, %v358_v29 }
 0x108   : > { %v363_v31 = vmul.f32 0.015625, %v362_v30 }
 0x10a   : > { %v364_v32 = vsub.f32 %v1468_v0, %v363_v31  ;;  %v402_v33 = vsub.f32 %v1475_v1, %v363_v31  ;;  %v430_v34 = vsub.f32 %v1486_v2, %v363_v31  ;;  %391 = vrot.lane.b32.xlu1 %v363_v31, %s1420_s24  ;;  %v458_v35 = vsub.f32 %v1495_v3, %v363_v31 }
 0x10b   : > { %380 = vrot.lane.b32.xlu2 %v363_v31, %s1421_s25  ;;  %v486_v36 = vsub.f32 %v1504_v4, %v363_v31  ;;  %v514_v37 = vsub.f32 %v1513_v5, %v363_v31  ;;  %v542_v38 = vsub.f32 %v1522_v6, %v363_v31  ;;  %369 = vrot.lane.b32.xlu0 %v363_v31, %s1422_s27 }
 0x10c   : > { %366 = vst.msk [vmem:[%s1632_s26] sm:$0xff] %vm365_vm0, %v364_v32  ;;  %v570_v39 = vsub.f32 %v1531_v7, %v363_v31  ;;  %v598_v40 = vsub.f32 %v1540_v8, %v363_v31  ;;  %v626_v41 = vsub.f32 %v1549_v9, %v363_v31  ;;  %v654_v42 = vsub.f32 %v1558_v10, %v363_v31 }
 0x10d   : > { %1240 = vst.msk [vmem:[%s1632_s26 + $0x20] sm:$0xff] %vm365_vm0, %v402_v33  ;;  %v682_v43 = vsub.f32 %v1567_v11, %v363_v31  ;;  %v710_v44 = vsub.f32 %v1576_v13, %v363_v31  ;;  %v738_v45 = vsub.f32 %v1585_v14, %v363_v31  ;;  %v766_v46 = vsub.f32 %v1594_v16, %v363_v31 }
 0x10e   : > { %1248 = vst.msk [vmem:[%s1632_s26 + $0x40] sm:$0xff] %vm365_vm0, %v430_v34  ;;  %v794_v47 = vsub.f32 %v1603_v20, %v363_v31 }
 0x10f   : > { %1256 = vst.msk [vmem:[%s1632_s26 + $0x60] sm:$0xff] %vm365_vm0, %v458_v35 }
 0x110   : > { %1264 = vst.msk [vmem:[%s1632_s26 + $0x80] sm:$0xff] %vm365_vm0, %v486_v36 }
 0x111   : > { %1272 = vst.msk [vmem:[%s1632_s26 + $0xa0] sm:$0xff] %vm365_vm0, %v514_v37 }
 0x112   : > { %1280 = vst.msk [vmem:[%s1632_s26 + $0xc0] sm:$0xff] %vm365_vm0, %v542_v38 }
 0x113   : > { %1288 = vst.msk [vmem:[%s1632_s26 + $0xe0] sm:$0xff] %vm365_vm0, %v570_v39 }
 0x114   : > { %1296 = vst.msk [vmem:[%s1632_s26 + $0x100] sm:$0xff] %vm365_vm0, %v598_v40 }
 0x115   : > { %1304 = vst.msk [vmem:[%s1632_s26 + $0x120] sm:$0xff] %vm365_vm0, %v626_v41 }
 0x116   : > { %1312 = vst.msk [vmem:[%s1632_s26 + $0x140] sm:$0xff] %vm365_vm0, %v654_v42 }
 0x117   : > { %1320 = vst.msk [vmem:[%s1632_s26 + $0x160] sm:$0xff] %vm365_vm0, %v682_v43 }
 0x118   : > { %1328 = vst.msk [vmem:[%s1632_s26 + $0x180] sm:$0xff] %vm365_vm0, %v710_v44 }
 0x119   : > { %1336 = vst.msk [vmem:[%s1632_s26 + $0x1a0] sm:$0xff] %vm365_vm0, %v738_v45 }
 0x11a   : > { %1344 = vst.msk [vmem:[%s1632_s26 + $0x1c0] sm:$0xff] %vm365_vm0, %v766_v46 }
 0x11b   : > { %1352 = vst.msk [vmem:[%s1632_s26 + $0x1e0] sm:$0xff] %vm365_vm0, %v794_v47 }
 0x165   : > { %v1678_v48 = vpop.permute.xlu2 %380 }
 0x166   : > { %v383_v49 = vsub.f32 %v1468_v0, %v1678_v48  ;;  %v414_v57 = vsub.f32 %v1475_v1, %v1678_v48  ;;  %v442_v59 = vsub.f32 %v1486_v2, %v1678_v48  ;;  %v470_v61 = vsub.f32 %v1495_v3, %v1678_v48 }
 0x167   : > { %v498_v63 = vsub.f32 %v1504_v4, %v1678_v48  ;;  %v526_v15 = vsub.f32 %v1513_v5, %v1678_v48  ;;  %v554_v18 = vsub.f32 %v1522_v6, %v1678_v48  ;;  %v582_v21 = vsub.f32 %v1531_v7, %v1678_v48 }
 0x168   : > { %385 = vrot.lane.b32.xlu0 %v383_v49, %s1419_s21  ;;  %v610_v23 = vsub.f32 %v1540_v8, %v1678_v48  ;;  %v638_v25 = vsub.f32 %v1549_v9, %v1678_v48  ;;  %v666_v27 = vsub.f32 %v1558_v10, %v1678_v48  ;;  %v694_v29 = vsub.f32 %v1567_v11, %v1678_v48 }
 0x169   : > { %v750_v36 = vsub.f32 %v1585_v14, %v1678_v48 }
 0x17c   : > { %v1683_v50 = vpop.permute.xlu1 %391 }
 0x17d   : > { %v394_v51 = vsub.f32 %v1468_v0, %v1683_v50  ;;  %v1688_v52 = vpop.permute.xlu0 %369  ;;  %v422_v55 = vsub.f32 %v1475_v1, %v1683_v50  ;;  %v730_v31 = vsub.f32 %v1576_v13, %v1683_v50  ;;  %v758_v34 = vsub.f32 %v1585_v14, %v1683_v50 }
 0x17e   : > { %v406_v53 = vsub.f32 %v1475_v1, %v1688_v52  ;;  %v372_v54 = vsub.f32 %v1468_v0, %v1688_v52  ;;  %v434_v56 = vsub.f32 %v1486_v2, %v1688_v52  ;;  %v450_v0 = vsub.f32 %v1486_v2, %v1683_v50 }
 0x17f   : > { %396 = vrot.lane.b32.xlu2 %v394_v51, %s1418_s20  ;;  %v462_v58 = vsub.f32 %v1495_v3, %v1688_v52  ;;  %v478_v1 = vsub.f32 %v1495_v3, %v1683_v50  ;;  %v490_v60 = vsub.f32 %v1504_v4, %v1688_v52  ;;  %v506_v2 = vsub.f32 %v1504_v4, %v1683_v50 }
 0x180   : > { %408 = vrot.lane.b32.xlu0 %v406_v53, %s1417_s19  ;;  %374 = vrot.lane.b32.xlu1 %v372_v54, %s1417_s19  ;;  %v518_v62 = vsub.f32 %v1513_v5, %v1688_v52  ;;  %v534_v3 = vsub.f32 %v1513_v5, %v1683_v50  ;;  %v546_v12 = vsub.f32 %v1522_v6, %v1688_v52 }
 0x181   : > { %v562_v4 = vsub.f32 %v1522_v6, %v1683_v50  ;;  %v574_v17 = vsub.f32 %v1531_v7, %v1688_v52  ;;  %v590_v5 = vsub.f32 %v1531_v7, %v1683_v50  ;;  %v602_v19 = vsub.f32 %v1540_v8, %v1688_v52 }
 0x182   : > { %v618_v6 = vsub.f32 %v1540_v8, %v1683_v50  ;;  %v630_v22 = vsub.f32 %v1549_v9, %v1688_v52  ;;  %v646_v7 = vsub.f32 %v1549_v9, %v1683_v50  ;;  %v658_v24 = vsub.f32 %v1558_v10, %v1688_v52 }
 0x183   : > { %v674_v8 = vsub.f32 %v1558_v10, %v1683_v50  ;;  %v686_v26 = vsub.f32 %v1567_v11, %v1688_v52  ;;  %v702_v9 = vsub.f32 %v1567_v11, %v1683_v50  ;;  %v714_v28 = vsub.f32 %v1576_v13, %v1688_v52 }
 0x184   : > { %v742_v32 = vsub.f32 %v1585_v14, %v1688_v52  ;;  %v722_v11 = vsub.f32 %v1576_v13, %v1678_v48  ;;  %v770_v35 = vsub.f32 %v1594_v16, %v1688_v52  ;;  %v786_v37 = vsub.f32 %v1594_v16, %v1683_v50 }
 0x185   : > { %v798_v38 = vsub.f32 %v1603_v20, %v1688_v52  ;;  %v778_v14 = vsub.f32 %v1594_v16, %v1678_v48  ;;  %v814_v42 = vsub.f32 %v1603_v20, %v1683_v50  ;;  %v806_v16 = vsub.f32 %v1603_v20, %v1678_v48 }
 0x187   : > { %424 = vrot.lane.b32.xlu2 %v422_v55, %s1418_s20 }
 0x188   : > { %436 = vrot.lane.b32.xlu0 %v434_v56, %s1417_s19  ;;  %416 = vrot.lane.b32.xlu1 %v414_v57, %s1419_s21 }
 0x18f   : > { %452 = vrot.lane.b32.xlu2 %v450_v0, %s1418_s20 }
 0x190   : > { %464 = vrot.lane.b32.xlu0 %v462_v58, %s1417_s19  ;;  %444 = vrot.lane.b32.xlu1 %v442_v59, %s1419_s21 }
 0x197   : > { %480 = vrot.lane.b32.xlu2 %v478_v1, %s1418_s20 }
 0x198   : > { %492 = vrot.lane.b32.xlu0 %v490_v60, %s1417_s19  ;;  %472 = vrot.lane.b32.xlu1 %v470_v61, %s1419_s21 }
 0x19f   : > { %508 = vrot.lane.b32.xlu2 %v506_v2, %s1418_s20 }
 0x1a0   : > { %520 = vrot.lane.b32.xlu0 %v518_v62, %s1417_s19  ;;  %500 = vrot.lane.b32.xlu1 %v498_v63, %s1419_s21 }
 0x1a7   : > { %536 = vrot.lane.b32.xlu2 %v534_v3, %s1418_s20 }
 0x1a8   : > { %548 = vrot.lane.b32.xlu0 %v546_v12, %s1417_s19  ;;  %528 = vrot.lane.b32.xlu1 %v526_v15, %s1419_s21 }
 0x1af   : > { %564 = vrot.lane.b32.xlu2 %v562_v4, %s1418_s20 }
 0x1b0   : > { %576 = vrot.lane.b32.xlu0 %v574_v17, %s1417_s19  ;;  %556 = vrot.lane.b32.xlu1 %v554_v18, %s1419_s21 }
 0x1b7   : > { %592 = vrot.lane.b32.xlu2 %v590_v5, %s1418_s20 }
 0x1b8   : > { %604 = vrot.lane.b32.xlu0 %v602_v19, %s1417_s19  ;;  %584 = vrot.lane.b32.xlu1 %v582_v21, %s1419_s21 }
 0x1bf   : > { %620 = vrot.lane.b32.xlu2 %v618_v6, %s1418_s20 }
 0x1c0   : > { %632 = vrot.lane.b32.xlu0 %v630_v22, %s1417_s19  ;;  %612 = vrot.lane.b32.xlu1 %v610_v23, %s1419_s21 }
 0x1c7   : > { %648 = vrot.lane.b32.xlu2 %v646_v7, %s1418_s20 }
 0x1c8   : > { %660 = vrot.lane.b32.xlu0 %v658_v24, %s1417_s19  ;;  %640 = vrot.lane.b32.xlu1 %v638_v25, %s1419_s21 }
 0x1cf   : > { %676 = vrot.lane.b32.xlu2 %v674_v8, %s1418_s20 }
 0x1d0   : > { %688 = vrot.lane.b32.xlu0 %v686_v26, %s1417_s19  ;;  %668 = vrot.lane.b32.xlu1 %v666_v27, %s1419_s21  ;;  %v984_v26 = vld [vmem:[%s1632_s26] sm:$0xff] (%p1455_p4) }
 0x1d1   : > { %985 = vst [vmem:[%s1930_s30] sm:$0xff] (%p1455_p4), %v984_v26 }
 0x1d7   : > { %704 = vrot.lane.b32.xlu2 %v702_v9, %s1418_s20 }
 0x1d8   : > { %716 = vrot.lane.b32.xlu0 %v714_v28, %s1417_s19  ;;  %696 = vrot.lane.b32.xlu1 %v694_v29, %s1419_s21  ;;  %v992_v29 = vld [vmem:[%s1632_s26 + $0x20] sm:$0xff] (%p1455_p4) }
 0x1d9   : > { %v397_v30 = vpop.permute.xlu2 %396  ;;  %993 = vst [vmem:[%s1930_s30 + $0x40] sm:$0xff] (%p1455_p4), %v992_v29 }
 0x1da   : > { %1238 = vst.msk [vmem:[%s1632_s26 + $0x18] sm:$0xff] %vm365_vm0, %v397_v30  ;;  %v386_v10 = vpop.permute.xlu0 %385 }
 0x1db   : > { %1237 = vst.msk [vmem:[%s1632_s26 + $0x10] sm:$0xff] %vm365_vm0, %v386_v10 }
 0x1df   : > { %732 = vrot.lane.b32.xlu2 %v730_v31, %s1418_s20 }
 0x1e0   : > { %744 = vrot.lane.b32.xlu0 %v742_v32, %s1417_s19  ;;  %724 = vrot.lane.b32.xlu1 %v722_v11, %s1419_s21  ;;  %v1000_v32 = vld [vmem:[%s1632_s26 + $0x40] sm:$0xff] (%p1455_p4) }
 0x1e1   : > { %v425_v33 = vpop.permute.xlu2 %424  ;;  %v990_v28 = vld [vmem:[%s1632_s26 + $0x18] sm:$0xff] (%p1455_p4)  ;;  %1001 = vst [vmem:[%s1930_s30 + $0x80] sm:$0xff] (%p1455_p4), %v1000_v32 }
 0x1e2   : > { %1246 = vst.msk [vmem:[%s1632_s26 + $0x38] sm:$0xff] %vm365_vm0, %v425_v33  ;;  %v988_v9 = vld [vmem:[%s1632_s26 + $0x10] sm:$0xff] (%p1455_p4) }
 0x1e3   : > { %989 = vst [vmem:[%s1930_s30 + $0x20] sm:$0xff] (%p1455_p4), %v988_v9 }
 0x1e4   : > { %991 = vst [vmem:[%s1930_s30 + $0x30] sm:$0xff] (%p1455_p4), %v990_v28 }
 0x1e7   : > { %760 = vrot.lane.b32.xlu2 %v758_v34, %s1418_s20 }
 0x1e8   : > { %772 = vrot.lane.b32.xlu0 %v770_v35, %s1417_s19  ;;  %752 = vrot.lane.b32.xlu1 %v750_v36, %s1419_s21  ;;  %v1008_v35 = vld [vmem:[%s1632_s26 + $0x60] sm:$0xff] (%p1455_p4) }
 0x1e9   : > { %v453_v13 = vpop.permute.xlu2 %452  ;;  %v998_v31 = vld [vmem:[%s1632_s26 + $0x38] sm:$0xff] (%p1455_p4)  ;;  %1009 = vst [vmem:[%s1930_s30 + $0xc0] sm:$0xff] (%p1455_p4), %v1008_v35 }
 0x1ea   : > { %1254 = vst.msk [vmem:[%s1632_s26 + $0x58] sm:$0xff] %vm365_vm0, %v453_v13 }
 0x1eb   : > { %999 = vst [vmem:[%s1930_s30 + $0x70] sm:$0xff] (%p1455_p4), %v998_v31 }
 0x1ef   : > { %788 = vrot.lane.b32.xlu2 %v786_v37, %s1418_s20 }
 0x1f0   : > { %800 = vrot.lane.b32.xlu0 %v798_v38, %s1417_s19  ;;  %780 = vrot.lane.b32.xlu1 %v778_v14, %s1419_s21  ;;  %v1016_v38 = vld [vmem:[%s1632_s26 + $0x80] sm:$0xff] (%p1455_p4) }
 0x1f1   : > { %v481_v39 = vpop.permute.xlu2 %480  ;;  %v1006_v34 = vld [vmem:[%s1632_s26 + $0x58] sm:$0xff] (%p1455_p4)  ;;  %1017 = vst [vmem:[%s1930_s30 + $0x100] sm:$0xff] (%p1455_p4), %v1016_v38 }
 0x1f2   : > { %1262 = vst.msk [vmem:[%s1632_s26 + $0x78] sm:$0xff] %vm365_vm0, %v481_v39  ;;  %v375_v40 = vpop.permute.xlu1 %374  ;;  %v409_v41 = vpop.permute.xlu0 %408 }
 0x1f3   : > { %1236 = vst.msk [vmem:[%s1632_s26 + $0x8] sm:$0xff] %vm365_vm0, %v375_v40 }
 0x1f4   : > { %1242 = vst.msk [vmem:[%s1632_s26 + $0x28] sm:$0xff] %vm365_vm0, %v409_v41  ;;  %v1024_v41 = vld [vmem:[%s1632_s26 + $0xa0] sm:$0xff] (%p1455_p4) }
 0x1f5   : > { %1007 = vst [vmem:[%s1930_s30 + $0xb0] sm:$0xff] (%p1455_p4), %v1006_v34 }
 0x1f6   : > { %1025 = vst [vmem:[%s1930_s30 + $0x140] sm:$0xff] (%p1455_p4), %v1024_v41 }
 0x1f7   : > { %816 = vrot.lane.b32.xlu2 %v814_v42, %s1418_s20 }
 0x1f8   : > { %808 = vrot.lane.b32.xlu1 %v806_v16, %s1419_s21 }
 0x1f9   : > { %v509_v43 = vpop.permute.xlu2 %508  ;;  %v1014_v37 = vld [vmem:[%s1632_s26 + $0x78] sm:$0xff] (%p1455_p4) }
 0x1fa   : > { %1270 = vst.msk [vmem:[%s1632_s26 + $0x98] sm:$0xff] %vm365_vm0, %v509_v43  ;;  %v417_v44 = vpop.permute.xlu1 %416  ;;  %v437_v45 = vpop.permute.xlu0 %436  ;;  %v986_v27 = vld [vmem:[%s1632_s26 + $0x8] sm:$0xff] (%p1455_p4) }
 0x1fb   : > { %1244 = vst.msk [vmem:[%s1632_s26 + $0x30] sm:$0xff] %vm365_vm0, %v417_v44  ;;  %v994_v30 = vld [vmem:[%s1632_s26 + $0x28] sm:$0xff] (%p1455_p4)  ;;  %v1032_v44 = vld [vmem:[%s1632_s26 + $0xc0] sm:$0xff] (%p1455_p4) }
 0x1fc   : > { %1250 = vst.msk [vmem:[%s1632_s26 + $0x48] sm:$0xff] %vm365_vm0, %v437_v45 }
 0x1fd   : > { %987 = vst [vmem:[%s1930_s30 + $0x10] sm:$0xff] (%p1455_p4), %v986_v27 }
 0x1fe   : > { %995 = vst [vmem:[%s1930_s30 + $0x50] sm:$0xff] (%p1455_p4), %v994_v30 }
 0x1ff   : > { %1015 = vst [vmem:[%s1930_s30 + $0xf0] sm:$0xff] (%p1455_p4), %v1014_v37 }
 0x200   : > { %1033 = vst [vmem:[%s1930_s30 + $0x180] sm:$0xff] (%p1455_p4), %v1032_v44 }
 0x201   : > { %v537_v46 = vpop.permute.xlu2 %536  ;;  %v1022_v40 = vld [vmem:[%s1632_s26 + $0x98] sm:$0xff] (%p1455_p4) }
 0x202   : > { %1278 = vst.msk [vmem:[%s1632_s26 + $0xb8] sm:$0xff] %vm365_vm0, %v537_v46  ;;  %v445_v20 = vpop.permute.xlu1 %444  ;;  %v465_v47 = vpop.permute.xlu0 %464  ;;  %v996_v10 = vld [vmem:[%s1632_s26 + $0x30] sm:$0xff] (%p1455_p4) }
 0x203   : > { %1252 = vst.msk [vmem:[%s1632_s26 + $0x50] sm:$0xff] %vm365_vm0, %v445_v20  ;;  %v1002_v11 = vld [vmem:[%s1632_s26 + $0x48] sm:$0xff] (%p1455_p4) }
 0x204   : > { %1258 = vst.msk [vmem:[%s1632_s26 + $0x68] sm:$0xff] %vm365_vm0, %v465_v47  ;;  %v1040_v47 = vld [vmem:[%s1632_s26 + $0xe0] sm:$0xff] (%p1455_p4) }
 0x205   : > { %997 = vst [vmem:[%s1930_s30 + $0x60] sm:$0xff] (%p1455_p4), %v996_v10 }
 0x206   : > { %1003 = vst [vmem:[%s1930_s30 + $0x90] sm:$0xff] (%p1455_p4), %v1002_v11 }
 0x207   : > { %1023 = vst [vmem:[%s1930_s30 + $0x130] sm:$0xff] (%p1455_p4), %v1022_v40 }
 0x208   : > { %1041 = vst [vmem:[%s1930_s30 + $0x1c0] sm:$0xff] (%p1455_p4), %v1040_v47 }
 0x209   : > { %v565_v48 = vpop.permute.xlu2 %564  ;;  %v1030_v43 = vld [vmem:[%s1632_s26 + $0xb8] sm:$0xff] (%p1455_p4) }
 0x20a   : > { %1286 = vst.msk [vmem:[%s1632_s26 + $0xd8] sm:$0xff] %vm365_vm0, %v565_v48  ;;  %v473_v49 = vpop.permute.xlu1 %472  ;;  %v493_v50 = vpop.permute.xlu0 %492  ;;  %v1004_v33 = vld [vmem:[%s1632_s26 + $0x50] sm:$0xff] (%p1455_p4) }
 0x20b   : > { %1260 = vst.msk [vmem:[%s1632_s26 + $0x70] sm:$0xff] %vm365_vm0, %v473_v49  ;;  %v1010_v36 = vld [vmem:[%s1632_s26 + $0x68] sm:$0xff] (%p1455_p4) }
 0x20c   : > { %1266 = vst.msk [vmem:[%s1632_s26 + $0x88] sm:$0xff] %vm365_vm0, %v493_v50 }
 0x20d   : > { %1005 = vst [vmem:[%s1930_s30 + $0xa0] sm:$0xff] (%p1455_p4), %v1004_v33 }
 0x20e   : > { %1011 = vst [vmem:[%s1930_s30 + $0xd0] sm:$0xff] (%p1455_p4), %v1010_v36 }
 0x20f   : > { %1031 = vst [vmem:[%s1930_s30 + $0x170] sm:$0xff] (%p1455_p4), %v1030_v43 }
 0x211   : > { %v593_v51 = vpop.permute.xlu2 %592  ;;  %v1038_v20 = vld [vmem:[%s1632_s26 + $0xd8] sm:$0xff] (%p1455_p4) }
 0x212   : > { %1294 = vst.msk [vmem:[%s1632_s26 + $0xf8] sm:$0xff] %vm365_vm0, %v593_v51  ;;  %v501_v52 = vpop.permute.xlu1 %500  ;;  %v521_v53 = vpop.permute.xlu0 %520  ;;  %v1012_v13 = vld [vmem:[%s1632_s26 + $0x70] sm:$0xff] (%p1455_p4)  ;;  %v1048_v51 = vld [vmem:[%s1632_s26 + $0x100] sm:$0xff] (%p1455_p4) }
 0x213   : > { %1268 = vst.msk [vmem:[%s1632_s26 + $0x90] sm:$0xff] %vm365_vm0, %v501_v52  ;;  %v1018_v14 = vld [vmem:[%s1632_s26 + $0x88] sm:$0xff] (%p1455_p4) }
 0x214   : > { %1274 = vst.msk [vmem:[%s1632_s26 + $0xa8] sm:$0xff] %vm365_vm0, %v521_v53 }
 0x215   : > { %1013 = vst [vmem:[%s1930_s30 + $0xe0] sm:$0xff] (%p1455_p4), %v1012_v13 }
 0x216   : > { %1019 = vst [vmem:[%s1930_s30 + $0x110] sm:$0xff] (%p1455_p4), %v1018_v14 }
 0x217   : > { %1039 = vst [vmem:[%s1930_s30 + $0x1b0] sm:$0xff] (%p1455_p4), %v1038_v20 }
 0x218   : > { %1049 = vst [vmem:[%s1930_s30 + $0x200] sm:$0xff] (%p1455_p4), %v1048_v51 }
 0x219   : > { %v621_v54 = vpop.permute.xlu2 %620  ;;  %v1046_v50 = vld [vmem:[%s1632_s26 + $0xf8] sm:$0xff] (%p1455_p4) }
 0x21a   : > { %1302 = vst.msk [vmem:[%s1632_s26 + $0x118] sm:$0xff] %vm365_vm0, %v621_v54  ;;  %v529_v55 = vpop.permute.xlu1 %528  ;;  %v549_v56 = vpop.permute.xlu0 %548  ;;  %v1020_v39 = vld [vmem:[%s1632_s26 + $0x90] sm:$0xff] (%p1455_p4) }
 0x21b   : > { %1276 = vst.msk [vmem:[%s1632_s26 + $0xb0] sm:$0xff] %vm365_vm0, %v529_v55  ;;  %v1026_v42 = vld [vmem:[%s1632_s26 + $0xa8] sm:$0xff] (%p1455_p4)  ;;  %v1056_v55 = vld [vmem:[%s1632_s26 + $0x120] sm:$0xff] (%p1455_p4) }
 0x21c   : > { %1282 = vst.msk [vmem:[%s1632_s26 + $0xc8] sm:$0xff] %vm365_vm0, %v549_v56 }
 0x21d   : > { %1021 = vst [vmem:[%s1930_s30 + $0x120] sm:$0xff] (%p1455_p4), %v1020_v39 }
 0x21e   : > { %1027 = vst [vmem:[%s1930_s30 + $0x150] sm:$0xff] (%p1455_p4), %v1026_v42 }
 0x21f   : > { %1047 = vst [vmem:[%s1930_s30 + $0x1f0] sm:$0xff] (%p1455_p4), %v1046_v50 }
 0x220   : > { %1057 = vst [vmem:[%s1930_s30 + $0x240] sm:$0xff] (%p1455_p4), %v1056_v55 }
 0x221   : > { %v649_v57 = vpop.permute.xlu2 %648  ;;  %v1054_v54 = vld [vmem:[%s1632_s26 + $0x118] sm:$0xff] (%p1455_p4) }
 0x222   : > { %1310 = vst.msk [vmem:[%s1632_s26 + $0x138] sm:$0xff] %vm365_vm0, %v649_v57  ;;  %v557_v0 = vpop.permute.xlu1 %556  ;;  %v577_v58 = vpop.permute.xlu0 %576  ;;  %v1028_v16 = vld [vmem:[%s1632_s26 + $0xb0] sm:$0xff] (%p1455_p4) }
 0x223   : > { %1284 = vst.msk [vmem:[%s1632_s26 + $0xd0] sm:$0xff] %vm365_vm0, %v557_v0  ;;  %v1034_v45 = vld [vmem:[%s1632_s26 + $0xc8] sm:$0xff] (%p1455_p4) }
 0x224   : > { %1290 = vst.msk [vmem:[%s1632_s26 + $0xe8] sm:$0xff] %vm365_vm0, %v577_v58  ;;  %v1064_v58 = vld [vmem:[%s1632_s26 + $0x140] sm:$0xff] (%p1455_p4) }
 0x225   : > { %1029 = vst [vmem:[%s1930_s30 + $0x160] sm:$0xff] (%p1455_p4), %v1028_v16 }
 0x226   : > { %1035 = vst [vmem:[%s1930_s30 + $0x190] sm:$0xff] (%p1455_p4), %v1034_v45 }
 0x227   : > { %1055 = vst [vmem:[%s1930_s30 + $0x230] sm:$0xff] (%p1455_p4), %v1054_v54 }
 0x228   : > { %1065 = vst [vmem:[%s1930_s30 + $0x280] sm:$0xff] (%p1455_p4), %v1064_v58 }
 0x229   : > { %v677_v59 = vpop.permute.xlu2 %676  ;;  %v1062_v0 = vld [vmem:[%s1632_s26 + $0x138] sm:$0xff] (%p1455_p4) }
 0x22a   : > { %1318 = vst.msk [vmem:[%s1632_s26 + $0x158] sm:$0xff] %vm365_vm0, %v677_v59  ;;  %v585_v1 = vpop.permute.xlu1 %584  ;;  %v605_v60 = vpop.permute.xlu0 %604  ;;  %v1036_v46 = vld [vmem:[%s1632_s26 + $0xd0] sm:$0xff] (%p1455_p4) }
 0x22b   : > { %1292 = vst.msk [vmem:[%s1632_s26 + $0xf0] sm:$0xff] %vm365_vm0, %v585_v1  ;;  %v1042_v48 = vld [vmem:[%s1632_s26 + $0xe8] sm:$0xff] (%p1455_p4) }
 0x22c   : > { %1298 = vst.msk [vmem:[%s1632_s26 + $0x108] sm:$0xff] %vm365_vm0, %v605_v60 }
 0x22d   : > { %1037 = vst [vmem:[%s1930_s30 + $0x1a0] sm:$0xff] (%p1455_p4), %v1036_v46 }
 0x22e   : > { %1043 = vst [vmem:[%s1930_s30 + $0x1d0] sm:$0xff] (%p1455_p4), %v1042_v48 }
 0x22f   : > { %1063 = vst [vmem:[%s1930_s30 + $0x270] sm:$0xff] (%p1455_p4), %v1062_v0 }
 0x231   : > { %v705_v61 = vpop.permute.xlu2 %704  ;;  %v1070_v60 = vld [vmem:[%s1632_s26 + $0x158] sm:$0xff] (%p1455_p4) }
 0x232   : > { %1326 = vst.msk [vmem:[%s1632_s26 + $0x178] sm:$0xff] %vm365_vm0, %v705_v61  ;;  %v613_v2 = vpop.permute.xlu1 %612  ;;  %v633_v62 = vpop.permute.xlu0 %632  ;;  %v1044_v49 = vld [vmem:[%s1632_s26 + $0xf0] sm:$0xff] (%p1455_p4)  ;;  %v1072_v61 = vld [vmem:[%s1632_s26 + $0x160] sm:$0xff] (%p1455_p4) }
 0x233   : > { %1300 = vst.msk [vmem:[%s1632_s26 + $0x110] sm:$0xff] %vm365_vm0, %v613_v2  ;;  %v1050_v52 = vld [vmem:[%s1632_s26 + $0x108] sm:$0xff] (%p1455_p4) }
 0x234   : > { %1306 = vst.msk [vmem:[%s1632_s26 + $0x128] sm:$0xff] %vm365_vm0, %v633_v62 }
 0x235   : > { %1045 = vst [vmem:[%s1930_s30 + $0x1e0] sm:$0xff] (%p1455_p4), %v1044_v49 }
 0x236   : > { %1051 = vst [vmem:[%s1930_s30 + $0x210] sm:$0xff] (%p1455_p4), %v1050_v52 }
 0x237   : > { %1071 = vst [vmem:[%s1930_s30 + $0x2b0] sm:$0xff] (%p1455_p4), %v1070_v60 }
 0x238   : > { %1073 = vst [vmem:[%s1930_s30 + $0x2c0] sm:$0xff] (%p1455_p4), %v1072_v61 }
 0x239   : > { %v733_v63 = vpop.permute.xlu2 %732 }
 0x23a   : > { %1334 = vst.msk [vmem:[%s1632_s26 + $0x198] sm:$0xff] %vm365_vm0, %v733_v63  ;;  %v641_v3 = vpop.permute.xlu1 %640  ;;  %v661_v12 = vpop.permute.xlu0 %660  ;;  %v1052_v53 = vld [vmem:[%s1632_s26 + $0x110] sm:$0xff] (%p1455_p4)  ;;  %v1078_v63 = vld [vmem:[%s1632_s26 + $0x178] sm:$0xff] (%p1455_p4) }
 0x23b   : > { %1308 = vst.msk [vmem:[%s1632_s26 + $0x130] sm:$0xff] %vm365_vm0, %v641_v3  ;;  %v1058_v56 = vld [vmem:[%s1632_s26 + $0x128] sm:$0xff] (%p1455_p4)  ;;  %v1080_v3 = vld [vmem:[%s1632_s26 + $0x180] sm:$0xff] (%p1455_p4) }
 0x23c   : > { %1314 = vst.msk [vmem:[%s1632_s26 + $0x148] sm:$0xff] %vm365_vm0, %v661_v12 }
 0x23d   : > { %1053 = vst [vmem:[%s1930_s30 + $0x220] sm:$0xff] (%p1455_p4), %v1052_v53 }
 0x23e   : > { %1059 = vst [vmem:[%s1930_s30 + $0x250] sm:$0xff] (%p1455_p4), %v1058_v56 }
 0x23f   : > { %1079 = vst [vmem:[%s1930_s30 + $0x2f0] sm:$0xff] (%p1455_p4), %v1078_v63 }
 0x240   : > { %1081 = vst [vmem:[%s1930_s30 + $0x300] sm:$0xff] (%p1455_p4), %v1080_v3 }
 0x241   : > { %v761_v15 = vpop.permute.xlu2 %760 }
 0x242   : > { %1342 = vst.msk [vmem:[%s1632_s26 + $0x1b8] sm:$0xff] %vm365_vm0, %v761_v15  ;;  %v669_v4 = vpop.permute.xlu1 %668  ;;  %v689_v17 = vpop.permute.xlu0 %688  ;;  %v1060_v57 = vld [vmem:[%s1632_s26 + $0x130] sm:$0xff] (%p1455_p4) }
 0x243   : > { %1316 = vst.msk [vmem:[%s1632_s26 + $0x150] sm:$0xff] %vm365_vm0, %v669_v4  ;;  %v1066_v59 = vld [vmem:[%s1632_s26 + $0x148] sm:$0xff] (%p1455_p4)  ;;  %v1086_v4 = vld [vmem:[%s1632_s26 + $0x198] sm:$0xff] (%p1455_p4) }
 0x244   : > { %1322 = vst.msk [vmem:[%s1632_s26 + $0x168] sm:$0xff] %vm365_vm0, %v689_v17  ;;  %v1088_v17 = vld [vmem:[%s1632_s26 + $0x1a0] sm:$0xff] (%p1455_p4) }
 0x245   : > { %1061 = vst [vmem:[%s1930_s30 + $0x260] sm:$0xff] (%p1455_p4), %v1060_v57 }
 0x246   : > { %1067 = vst [vmem:[%s1930_s30 + $0x290] sm:$0xff] (%p1455_p4), %v1066_v59 }
 0x247   : > { %1087 = vst [vmem:[%s1930_s30 + $0x330] sm:$0xff] (%p1455_p4), %v1086_v4 }
 0x248   : > { %1089 = vst [vmem:[%s1930_s30 + $0x340] sm:$0xff] (%p1455_p4), %v1088_v17 }
 0x249   : > { %v789_v18 = vpop.permute.xlu2 %788 }
 0x24a   : > { %1350 = vst.msk [vmem:[%s1632_s26 + $0x1d8] sm:$0xff] %vm365_vm0, %v789_v18  ;;  %v697_v5 = vpop.permute.xlu1 %696  ;;  %v717_v19 = vpop.permute.xlu0 %716  ;;  %v1068_v1 = vld [vmem:[%s1632_s26 + $0x150] sm:$0xff] (%p1455_p4) }
 0x24b   : > { %1324 = vst.msk [vmem:[%s1632_s26 + $0x170] sm:$0xff] %vm365_vm0, %v697_v5  ;;  %v1074_v2 = vld [vmem:[%s1632_s26 + $0x168] sm:$0xff] (%p1455_p4) }
 0x24c   : > { %1330 = vst.msk [vmem:[%s1632_s26 + $0x188] sm:$0xff] %vm365_vm0, %v717_v19  ;;  %v1094_v19 = vld [vmem:[%s1632_s26 + $0x1b8] sm:$0xff] (%p1455_p4) }
 0x24d   : > { %1069 = vst [vmem:[%s1930_s30 + $0x2a0] sm:$0xff] (%p1455_p4), %v1068_v1 }
 0x24e   : > { %1075 = vst [vmem:[%s1930_s30 + $0x2d0] sm:$0xff] (%p1455_p4), %v1074_v2 }
 0x24f   : > { %1095 = vst [vmem:[%s1930_s30 + $0x370] sm:$0xff] (%p1455_p4), %v1094_v19 }
 0x251   : > { %v817_v21 = vpop.permute.xlu2 %816 }
 0x252   : > { %1358 = vst.msk [vmem:[%s1632_s26 + $0x1f8] sm:$0xff] %vm365_vm0, %v817_v21  ;;  %v725_v6 = vpop.permute.xlu1 %724  ;;  %v745_v22 = vpop.permute.xlu0 %744  ;;  %v1076_v62 = vld [vmem:[%s1632_s26 + $0x170] sm:$0xff] (%p1455_p4)  ;;  %v1096_v21 = vld [vmem:[%s1632_s26 + $0x1c0] sm:$0xff] (%p1455_p4) }
 0x253   : > { %1332 = vst.msk [vmem:[%s1632_s26 + $0x190] sm:$0xff] %vm365_vm0, %v725_v6  ;;  %v1082_v12 = vld [vmem:[%s1632_s26 + $0x188] sm:$0xff] (%p1455_p4) }
 0x254   : > { %1338 = vst.msk [vmem:[%s1632_s26 + $0x1a8] sm:$0xff] %vm365_vm0, %v745_v22 }
 0x255   : > { %1077 = vst [vmem:[%s1930_s30 + $0x2e0] sm:$0xff] (%p1455_p4), %v1076_v62 }
 0x256   : > { %1083 = vst [vmem:[%s1930_s30 + $0x310] sm:$0xff] (%p1455_p4), %v1082_v12 }
 0x257   : > { %1097 = vst [vmem:[%s1930_s30 + $0x380] sm:$0xff] (%p1455_p4), %v1096_v21 }
 0x25a   : > { %v753_v23 = vpop.permute.xlu1 %752  ;;  %v773_v7 = vpop.permute.xlu0 %772  ;;  %v1084_v15 = vld [vmem:[%s1632_s26 + $0x190] sm:$0xff] (%p1455_p4) }
 0x25b   : > { %1340 = vst.msk [vmem:[%s1632_s26 + $0x1b0] sm:$0xff] %vm365_vm0, %v753_v23  ;;  %v1090_v18 = vld [vmem:[%s1632_s26 + $0x1a8] sm:$0xff] (%p1455_p4)  ;;  %v1102_v23 = vld [vmem:[%s1632_s26 + $0x1d8] sm:$0xff] (%p1455_p4) }
 0x25c   : > { %1346 = vst.msk [vmem:[%s1632_s26 + $0x1c8] sm:$0xff] %vm365_vm0, %v773_v7  ;;  %v1104_v7 = vld [vmem:[%s1632_s26 + $0x1e0] sm:$0xff] (%p1455_p4) }
 0x25d   : > { %1085 = vst [vmem:[%s1930_s30 + $0x320] sm:$0xff] (%p1455_p4), %v1084_v15 }
 0x25e   : > { %1091 = vst [vmem:[%s1930_s30 + $0x350] sm:$0xff] (%p1455_p4), %v1090_v18 }
 0x25f   : > { %1103 = vst [vmem:[%s1930_s30 + $0x3b0] sm:$0xff] (%p1455_p4), %v1102_v23 }
 0x260   : > { %1105 = vst [vmem:[%s1930_s30 + $0x3c0] sm:$0xff] (%p1455_p4), %v1104_v7 }
 0x262   : > { %v781_v24 = vpop.permute.xlu1 %780  ;;  %v801_v25 = vpop.permute.xlu0 %800  ;;  %v1092_v5 = vld [vmem:[%s1632_s26 + $0x1b0] sm:$0xff] (%p1455_p4) }
 0x263   : > { %1348 = vst.msk [vmem:[%s1632_s26 + $0x1d0] sm:$0xff] %vm365_vm0, %v781_v24  ;;  %v1098_v6 = vld [vmem:[%s1632_s26 + $0x1c8] sm:$0xff] (%p1455_p4) }
 0x264   : > { %1354 = vst.msk [vmem:[%s1632_s26 + $0x1e8] sm:$0xff] %vm365_vm0, %v801_v25 }
 0x265   : > { %1093 = vst [vmem:[%s1930_s30 + $0x360] sm:$0xff] (%p1455_p4), %v1092_v5 }
 0x266   : > { %1099 = vst [vmem:[%s1930_s30 + $0x390] sm:$0xff] (%p1455_p4), %v1098_v6 }
 0x267   : > { %827 = sbr.rel (!%p1455_p4) target bundleno = 628 (0x274), region = 28 }
 0x26a   : > { %v809_v8 = vpop.permute.xlu1 %808  ;;  %v1100_v22 = vld [vmem:[%s1632_s26 + $0x1d0] sm:$0xff] (%p1455_p4) }
 0x26b   : > { %1356 = vst.msk [vmem:[%s1632_s26 + $0x1f0] sm:$0xff] %vm365_vm0, %v809_v8  ;;  %v1106_v24 = vld [vmem:[%s1632_s26 + $0x1e8] sm:$0xff] (%p1455_p4)  ;;  %v1110_v8 = vld [vmem:[%s1632_s26 + $0x1f8] sm:$0xff] (%p1455_p4) }
 0x26c   : > { %1101 = vst [vmem:[%s1930_s30 + $0x3a0] sm:$0xff] %v1100_v22 }
 0x26d   : > { %1107 = vst [vmem:[%s1930_s30 + $0x3d0] sm:$0xff] %v1106_v24 }
 0x26e   : > { %1111 = vst [vmem:[%s1930_s30 + $0x3f0] sm:$0xff] %v1110_v8 }
 0x272   : > { %v1108_v25 = vld [vmem:[%s1632_s26 + $0x1f0] sm:$0xff] }
 0x273   : > { %1109 = vst [vmem:[%s1930_s30 + $0x3e0] sm:$0xff] %v1108_v25 }
 0x274 PF: > { %p8_p7 = scmp.ge.s32.totalorder %s1446_s10, 4   ;;  %s2073_s6 = smov %s1411_s7 }
 0x275   : > { %s2074_s7 = smov %s1453_s13  ;;  %s2075_s8 = smov %s1446_s10 }
 0x276   :  { %10 = sbr.rel (!%p8_p7) target bundleno = 2 (0x2), region = 168 }

</bundles_post_ra>
